<compile_context>
chip_gen: v7x
topology: tpu7x:2x2x1
jax: 0.10.0
libtpu: 0.0.40
codegen_flags: <defaults>
</compile_context>

<pallas_src>
import jax
import jax.numpy as jnp
from jax.experimental import pallas as pl
from jax.experimental.pallas import tpu as pltpu

IN_DIM  = 2 * 28 * 28      # 1568
HID1    = 28 * 28          # 784
SUB_HID = HID1 // 2        # 392  (sub-model hidden)
SUB_OUT = 10               # sub-model output
OUT1    = 20               # patched_m output
MLP_HID = 4
MLP_OUT = 1
PAD     = 128              # lane padding for small feature dims


# ---------------------------------------------------------------------------
# Pallas kernel: whole forward pass fused (all weights resident in VMEM).
#
#   h_lo = ReLU(x[:, :784] @ Wf1 + b1_lo)          (bt, 392)
#   h_hi = ReLU(x[:, 784:] @ Wf1 + b1_hi)          (bt, 392)
#   z    = h_lo @ Wfa + h_hi @ Wfb + c             (bt, 128)  lanes 0:4 live
#   out  = ReLU(z) @ Wm2 + bm2                     (bt, 128)  lane  0   live
#
# where Wf1 = m_fc1_w.T and (Wfa|Wfb, c) is the offline fold of
# patched_m.fc2 -> linear_layer -> mlp.fc1 (all affine, no ReLU in between).
# ---------------------------------------------------------------------------
def fused_mlp_kernel(xlo_ref, xhi_ref, wf1_ref, blo_ref, bhi_ref,
                     wfa_ref, wfb_ref, c_ref, wm2_ref, bm2_ref, o_ref):
    f32 = jnp.float32
    bf16 = jnp.bfloat16

    w1 = wf1_ref[...]                                                 # (784, 392) bf16

    # patched_m.fc1 (block-diagonal, both blocks == m_fc1_w) + ReLU.
    h_lo = jnp.dot(xlo_ref[...].astype(bf16), w1,
                   preferred_element_type=f32) + blo_ref[...]
    h_hi = jnp.dot(xhi_ref[...].astype(bf16), w1,
                   preferred_element_type=f32) + bhi_ref[...]
    h_lo = jnp.maximum(h_lo, 0.0).astype(bf16)                        # (bt, 392)
    h_hi = jnp.maximum(h_hi, 0.0).astype(bf16)                        # (bt, 392)

    # Folded fc2 -> linear_layer -> mlp.fc1 (affine chain), then ReLU.
    z = (jnp.dot(h_lo, wfa_ref[...], preferred_element_type=f32)
         + jnp.dot(h_hi, wfb_ref[...], preferred_element_type=f32)
         + c_ref[...])                                                # (bt, 128)
    r = jnp.maximum(z, 0.0).astype(bf16)

    # mlp.fc2: Linear(4 -> 1), padded to 128 lanes.
    out = jnp.dot(r, wm2_ref[...], preferred_element_type=f32) + bm2_ref[...]
    o_ref[...] = out.astype(o_ref.dtype)                              # (bt, 128)


def patched_model_forward(x, kernel_params, *, bt=None):
    """x: (B, 1568) f32 -> (B, 1) f32."""
    B = x.shape[0]
    if bt is None:
        bt = B if B <= 512 else 512
    assert B % bt == 0, "batch must be divisible by the batch tile"
    if bt != B:
        assert bt % 8 == 0, "partial batch tiles must be a multiple of 8"

    x = x.astype(jnp.float32)
    x_lo = x[:, :HID1]                       # (B, 784) — feeds block 1 (m_1)
    x_hi = x[:, HID1:]                       # (B, 784) — feeds block 2 (m_2)

    grid = (B // bt,)
    # For a tiny grid don't bother sharding across TensorCores (each core would
    # have to DMA its own copy of the resident weights).
    dim_sem = ("parallel",) if grid[0] > 1 else ("arbitrary",)

    def const_spec(shape):
        return pl.BlockSpec(shape, lambda i: (0, 0))

    in_specs = [
        pl.BlockSpec((bt, HID1), lambda i: (i, 0)),      # x_lo
        pl.BlockSpec((bt, HID1), lambda i: (i, 0)),      # x_hi
    ] + [const_spec(p.shape) for p in kernel_params]

    out = pl.pallas_call(
        fused_mlp_kernel,
        out_shape=jax.ShapeDtypeStruct((B, PAD), jnp.float32),
        grid=grid,
        in_specs=in_specs,
        out_specs=pl.BlockSpec((bt, PAD), lambda i: (i, 0)),
        compiler_params=pltpu.CompilerParams(
            dimension_semantics=dim_sem,
            vmem_limit_bytes=32 * 1024 * 1024,
        ),
    )(x_lo, x_hi, *kernel_params)
    return out[:, :MLP_OUT]


# ---------------------------------------------------------------------------
# Deterministic parameter construction (mirrors PatchedModel.__init__).
# ---------------------------------------------------------------------------
def _linear_init(key, out_f, in_f):
    """PyTorch nn.Linear default init: U(-1/sqrt(in), 1/sqrt(in))."""
    kw, kb = jax.random.split(key)
    bound = 1.0 / (in_f ** 0.5)
    w = jax.random.uniform(kw, (out_f, in_f), jnp.float32, -bound, bound)
    b = jax.random.uniform(kb, (out_f,), jnp.float32, -bound, bound)
    return w, b


def build_raw_params(key):
    keys = jax.random.split(key, 7)

    # m_1 and m_2 both load the SAME checkpoint -> identical parameters.
    m_fc1_w, _ = _linear_init(keys[0], SUB_HID, HID1)     # (392, 784)
    m_fc2_w, _ = _linear_init(keys[1], SUB_OUT, SUB_HID)  # (10, 392)

    # patched_m biases keep the SimpleMLP(1568, 784, 20) init (not patched).
    _, p_fc1_b = _linear_init(keys[2], HID1, IN_DIM)      # (784,)
    _, p_fc2_b = _linear_init(keys[3], OUT1, HID1)        # (20,)

    Wl,  bl  = _linear_init(keys[4], OUT1, OUT1)          # linear_layer 20->20
    Wm1, bm1 = _linear_init(keys[5], MLP_HID, OUT1)       # mlp.fc1 20->4
    Wm2, bm2 = _linear_init(keys[6], MLP_OUT, MLP_HID)    # mlp.fc2 4->1

    return dict(m_fc1_w=m_fc1_w, m_fc2_w=m_fc2_w, b1=p_fc1_b, b2=p_fc2_b,
                Wl=Wl, bl=bl, Wm1=Wm1, bm1=bm1, Wm2=Wm2, bm2=bm2)


def _pad_to(a, shape):
    return jnp.pad(a, [(0, t - s) for s, t in zip(a.shape, shape)])


def _block_diag_weights(raw):
    """Dense block-diagonal W1 (784,1568) / W2 (20,784) — zeros=True patching."""
    W1 = jnp.zeros((HID1, IN_DIM), jnp.float32)
    W1 = (W1.at[:SUB_HID, :HID1].set(raw["m_fc1_w"])
            .at[SUB_HID:, HID1:].set(raw["m_fc1_w"]))
    W2 = jnp.zeros((OUT1, HID1), jnp.float32)
    W2 = (W2.at[:SUB_OUT, :SUB_HID].set(raw["m_fc2_w"])
            .at[SUB_OUT:, SUB_HID:].set(raw["m_fc2_w"]))
    return W1, W2


def pack_kernel_params(raw, weight_dtype=jnp.bfloat16):
    """Exploit structure + fold affine chain offline (f32), then cast/pad.

    Returns [Wf1, b1_lo, b1_hi, Wfa, Wfb, c_pad, Wm2_pad, bm2_pad].
    """
    _, W2 = _block_diag_weights(raw)

    # Fold fc2 -> linear_layer -> mlp.fc1 (no nonlinearity in between), f32.
    A = raw["Wm1"] @ raw["Wl"] @ W2                                   # (4, 784)
    c = raw["Wm1"] @ (raw["Wl"] @ raw["b2"] + raw["bl"]) + raw["bm1"] # (4,)

    wf1   = raw["m_fc1_w"].T.astype(weight_dtype)                     # (784, 392)
    b1_lo = raw["b1"][:SUB_HID].reshape(1, SUB_HID)                   # (1, 392) f32
    b1_hi = raw["b1"][SUB_HID:].reshape(1, SUB_HID)                   # (1, 392) f32
    wfa   = _pad_to(A[:, :SUB_HID].T, (SUB_HID, PAD)).astype(weight_dtype)
    wfb   = _pad_to(A[:, SUB_HID:].T, (SUB_HID, PAD)).astype(weight_dtype)
    c_pad = _pad_to(c.reshape(1, MLP_HID), (1, PAD))                  # f32
    wm2   = _pad_to(raw["Wm2"].T, (PAD, PAD)).astype(weight_dtype)
    bm2   = _pad_to(raw["bm2"].reshape(1, MLP_OUT), (1, PAD))         # f32
    return [wf1, b1_lo, b1_hi, wfa, wfb, c_pad, wm2, bm2]


# ---------------------------------------------------------------------------
# References.
# ---------------------------------------------------------------------------
def reference_forward_f32(x, raw):
    """Exact (f32, unfolded, dense block-diagonal) module semantics."""
    W1, W2 = _block_diag_weights(raw)
    h1 = jnp.maximum(x @ W1.T + raw["b1"], 0.0)
    y1 = h1 @ W2.T + raw["b2"]
    y2 = y1 @ raw["Wl"].T + raw["bl"]
    h2 = jnp.maximum(y2 @ raw["Wm1"].T + raw["bm1"], 0.0)
    return h2 @ raw["Wm2"].T + raw["bm2"]


def reference_forward_quantized(x, params):
    """Same math as the kernel (bf16 weights/operands, f32 accumulation)."""
    wf1, b1_lo, b1_hi, wfa, wfb, c_pad, wm2, bm2 = params
    bf16, f32 = jnp.bfloat16, jnp.float32
    x_lo = x[:, :HID1].astype(bf16)
    x_hi = x[:, HID1:].astype(bf16)
    h_lo = jnp.maximum(jnp.dot(x_lo, wf1, preferred_element_type=f32) + b1_lo, 0.0)
    h_hi = jnp.maximum(jnp.dot(x_hi, wf1, preferred_element_type=f32) + b1_hi, 0.0)
    z = (jnp.dot(h_lo.astype(bf16), wfa, preferred_element_type=f32)
         + jnp.dot(h_hi.astype(bf16), wfb, preferred_element_type=f32) + c_pad)
    r = jnp.maximum(z, 0.0).astype(bf16)
    out = jnp.dot(r, wm2, preferred_element_type=f32) + bm2
    return out[:, :MLP_OUT]


if __name__ == "__main__":
    key = jax.random.PRNGKey(0)
    kx, kp = jax.random.split(key)

    B = 16
    x = jax.random.normal(kx, (B, IN_DIM), jnp.float32)   # forward implies [B, 2*28*28]

    raw = build_raw_params(kp)
    kernel_params = pack_kernel_params(raw)

    out = patched_model_forward(x, kernel_params)
    out = jax.block_until_ready(out)
    assert out.shape == (B, MLP_OUT)

    # Tight check: kernel matches the same bf16-weight / f32-accum math.
    ref_q = reference_forward_quantized(x, kernel_params)
    assert jnp.allclose(out, ref_q, atol=1e-4, rtol=1e-3), "kernel/quantized-ref mismatch"

    # Loose check: close to the exact f32 module semantics (bf16 weight rounding).
    ref_f32 = reference_forward_f32(x, raw)
    assert jnp.allclose(out, ref_f32, atol=2e-2, rtol=5e-2), "kernel/f32-ref mismatch"

    print("KERNEL_OK")
</pallas_src>

<mosaic_0001>
module attributes {stable_mosaic.version = 11 : i64} {
  func.func @fused_mlp_kernel(%arg0: i32, %arg1: memref<16x784xf32, #tpu.memory_space<vmem>>, %arg2: memref<16x784xf32, #tpu.memory_space<vmem>>, %arg3: memref<784x392xbf16, #tpu.memory_space<vmem>>, %arg4: memref<1x392xf32, #tpu.memory_space<vmem>>, %arg5: memref<1x392xf32, #tpu.memory_space<vmem>>, %arg6: memref<392x128xbf16, #tpu.memory_space<vmem>>, %arg7: memref<392x128xbf16, #tpu.memory_space<vmem>>, %arg8: memref<1x128xf32, #tpu.memory_space<vmem>>, %arg9: memref<128x128xbf16, #tpu.memory_space<vmem>>, %arg10: memref<1x128xf32, #tpu.memory_space<vmem>>, %arg11: memref<16x128xf32, #tpu.memory_space<vmem>>) attributes {dimension_semantics = [#tpu.dimension_semantics<arbitrary>], iteration_bounds = array<i64: 1>, scalar_prefetch = 0 : i64, scratch_operands = 0 : i64, tpu.core_type = #tpu.core_type<tc>, window_params = [{transform_indices = @transform_0, window_bounds = array<i64: 16, 784>}, {transform_indices = @transform_1, window_bounds = array<i64: 16, 784>}, {pipeline_mode = #tpu.pipeline_mode<synchronous>, transform_indices = @transform_2, window_bounds = array<i64: 784, 392>}, {pipeline_mode = #tpu.pipeline_mode<synchronous>, transform_indices = @transform_3, window_bounds = array<i64: 1, 392>}, {pipeline_mode = #tpu.pipeline_mode<synchronous>, transform_indices = @transform_4, window_bounds = array<i64: 1, 392>}, {pipeline_mode = #tpu.pipeline_mode<synchronous>, transform_indices = @transform_5, window_bounds = array<i64: 392, 128>}, {pipeline_mode = #tpu.pipeline_mode<synchronous>, transform_indices = @transform_6, window_bounds = array<i64: 392, 128>}, {pipeline_mode = #tpu.pipeline_mode<synchronous>, transform_indices = @transform_7, window_bounds = array<i64: 1, 128>}, {pipeline_mode = #tpu.pipeline_mode<synchronous>, transform_indices = @transform_8, window_bounds = array<i64: 128, 128>}, {pipeline_mode = #tpu.pipeline_mode<synchronous>, transform_indices = @transform_9, window_bounds = array<i64: 1, 128>}, {transform_indices = @transform_10, window_bounds = array<i64: 16, 128>}]} {
    %c0 = arith.constant 0 : index
    %c0_0 = arith.constant 0 : index
    %0 = vector.load %arg3[%c0, %c0_0] : memref<784x392xbf16, #tpu.memory_space<vmem>>, vector<784x392xbf16>
    %c0_1 = arith.constant 0 : index
    %c0_2 = arith.constant 0 : index
    %1 = vector.load %arg1[%c0_1, %c0_2] : memref<16x784xf32, #tpu.memory_space<vmem>>, vector<16x784xf32>
    %2 = arith.truncf %1 : vector<16x784xf32> to vector<16x784xbf16>
    %cst = arith.constant dense<0.000000e+00> : vector<16x392xf32>
    %3 = tpu.matmul %2, %0, %cst {dimension_numbers = #tpu.dot_dimension_numbers<[1], [0], [0], [1], [0, 0, 1, 1], [], []>} : vector<16x784xbf16>, vector<784x392xbf16>, vector<16x392xf32> -> vector<16x392xf32>
    %c0_3 = arith.constant 0 : index
    %c0_4 = arith.constant 0 : index
    %4 = vector.load %arg4[%c0_3, %c0_4] : memref<1x392xf32, #tpu.memory_space<vmem>>, vector<1x392xf32>
    %5 = vector.broadcast %4 : vector<1x392xf32> to vector<16x392xf32>
    %6 = arith.addf %3, %5 : vector<16x392xf32>
    %c0_5 = arith.constant 0 : index
    %c0_6 = arith.constant 0 : index
    %7 = vector.load %arg2[%c0_5, %c0_6] : memref<16x784xf32, #tpu.memory_space<vmem>>, vector<16x784xf32>
    %8 = arith.truncf %7 : vector<16x784xf32> to vector<16x784xbf16>
    %cst_7 = arith.constant dense<0.000000e+00> : vector<16x392xf32>
    %9 = tpu.matmul %8, %0, %cst_7 {dimension_numbers = #tpu.dot_dimension_numbers<[1], [0], [0], [1], [0, 0, 1, 1], [], []>} : vector<16x784xbf16>, vector<784x392xbf16>, vector<16x392xf32> -> vector<16x392xf32>
    %c0_8 = arith.constant 0 : index
    %c0_9 = arith.constant 0 : index
    %10 = vector.load %arg5[%c0_8, %c0_9] : memref<1x392xf32, #tpu.memory_space<vmem>>, vector<1x392xf32>
    %11 = vector.broadcast %10 : vector<1x392xf32> to vector<16x392xf32>
    %12 = arith.addf %9, %11 : vector<16x392xf32>
    %cst_10 = arith.constant 0.000000e+00 : f32
    %13 = vector.broadcast %cst_10 : f32 to vector<16x392xf32>
    %14 = arith.maximumf %6, %13 : vector<16x392xf32>
    %15 = arith.truncf %14 : vector<16x392xf32> to vector<16x392xbf16>
    %cst_11 = arith.constant 0.000000e+00 : f32
    %16 = vector.broadcast %cst_11 : f32 to vector<16x392xf32>
    %17 = arith.maximumf %12, %16 : vector<16x392xf32>
    %18 = arith.truncf %17 : vector<16x392xf32> to vector<16x392xbf16>
    %c0_12 = arith.constant 0 : index
    %c0_13 = arith.constant 0 : index
    %19 = vector.load %arg6[%c0_12, %c0_13] : memref<392x128xbf16, #tpu.memory_space<vmem>>, vector<392x128xbf16>
    %cst_14 = arith.constant dense<0.000000e+00> : vector<16x128xf32>
    %20 = tpu.matmul %15, %19, %cst_14 {dimension_numbers = #tpu.dot_dimension_numbers<[1], [0], [0], [1], [0, 0, 1, 1], [], []>} : vector<16x392xbf16>, vector<392x128xbf16>, vector<16x128xf32> -> vector<16x128xf32>
    %c0_15 = arith.constant 0 : index
    %c0_16 = arith.constant 0 : index
    %21 = vector.load %arg7[%c0_15, %c0_16] : memref<392x128xbf16, #tpu.memory_space<vmem>>, vector<392x128xbf16>
    %cst_17 = arith.constant dense<0.000000e+00> : vector<16x128xf32>
    %22 = tpu.matmul %18, %21, %cst_17 {dimension_numbers = #tpu.dot_dimension_numbers<[1], [0], [0], [1], [0, 0, 1, 1], [], []>} : vector<16x392xbf16>, vector<392x128xbf16>, vector<16x128xf32> -> vector<16x128xf32>
    %23 = arith.addf %20, %22 : vector<16x128xf32>
    %c0_18 = arith.constant 0 : index
    %c0_19 = arith.constant 0 : index
    %24 = vector.load %arg8[%c0_18, %c0_19] : memref<1x128xf32, #tpu.memory_space<vmem>>, vector<1x128xf32>
    %25 = vector.broadcast %24 : vector<1x128xf32> to vector<16x128xf32>
    %26 = arith.addf %23, %25 : vector<16x128xf32>
    %cst_20 = arith.constant 0.000000e+00 : f32
    %27 = vector.broadcast %cst_20 : f32 to vector<16x128xf32>
    %28 = arith.maximumf %26, %27 : vector<16x128xf32>
    %29 = arith.truncf %28 : vector<16x128xf32> to vector<16x128xbf16>
    %c0_21 = arith.constant 0 : index
    %c0_22 = arith.constant 0 : index
    %30 = vector.load %arg9[%c0_21, %c0_22] : memref<128x128xbf16, #tpu.memory_space<vmem>>, vector<128x128xbf16>
    %cst_23 = arith.constant dense<0.000000e+00> : vector<16x128xf32>
    %31 = tpu.matmul %29, %30, %cst_23 {dimension_numbers = #tpu.dot_dimension_numbers<[1], [0], [0], [1], [0, 0, 1, 1], [], []>} : vector<16x128xbf16>, vector<128x128xbf16>, vector<16x128xf32> -> vector<16x128xf32>
    %c0_24 = arith.constant 0 : index
    %c0_25 = arith.constant 0 : index
    %32 = vector.load %arg10[%c0_24, %c0_25] : memref<1x128xf32, #tpu.memory_space<vmem>>, vector<1x128xf32>
    %33 = vector.broadcast %32 : vector<1x128xf32> to vector<16x128xf32>
    %34 = arith.addf %31, %33 : vector<16x128xf32>
    %c0_26 = arith.constant 0 : index
    %c0_27 = arith.constant 0 : index
    %35 = vector.load %arg11[%c0_26, %c0_27] : memref<16x128xf32, #tpu.memory_space<vmem>>, vector<16x128xf32>
    tpu.vector_store %arg11[%c0_26, %c0_27], %34 {strides = array<i32>} : memref<16x128xf32, #tpu.memory_space<vmem>>, vector<16x128xf32>,
    return
  }
  func.func @transform_0(%arg0: i32) -> (i32, i32) {
    %c0_i32 = arith.constant 0 : i32
    %c0_i32_0 = arith.constant 0 : i32
    return %arg0, %c0_i32 : i32, i32
  }
  func.func @transform_1(%arg0: i32) -> (i32, i32) {
    %c0_i32 = arith.constant 0 : i32
    %c0_i32_0 = arith.constant 0 : i32
    return %arg0, %c0_i32 : i32, i32
  }
  func.func @transform_2(%arg0: i32) -> (i32, i32) {
    %c0_i32 = arith.constant 0 : i32
    %c0_i32_0 = arith.constant 0 : i32
    %c0_i32_1 = arith.constant 0 : i32
    return %c0_i32, %c0_i32_0 : i32, i32
  }
  func.func @transform_3(%arg0: i32) -> (i32, i32) {
    %c0_i32 = arith.constant 0 : i32
    %c0_i32_0 = arith.constant 0 : i32
    %c0_i32_1 = arith.constant 0 : i32
    return %c0_i32, %c0_i32_0 : i32, i32
  }
  func.func @transform_4(%arg0: i32) -> (i32, i32) {
    %c0_i32 = arith.constant 0 : i32
    %c0_i32_0 = arith.constant 0 : i32
    %c0_i32_1 = arith.constant 0 : i32
    return %c0_i32, %c0_i32_0 : i32, i32
  }
  func.func @transform_5(%arg0: i32) -> (i32, i32) {
    %c0_i32 = arith.constant 0 : i32
    %c0_i32_0 = arith.constant 0 : i32
    %c0_i32_1 = arith.constant 0 : i32
    return %c0_i32, %c0_i32_0 : i32, i32
  }
  func.func @transform_6(%arg0: i32) -> (i32, i32) {
    %c0_i32 = arith.constant 0 : i32
    %c0_i32_0 = arith.constant 0 : i32
    %c0_i32_1 = arith.constant 0 : i32
    return %c0_i32, %c0_i32_0 : i32, i32
  }
  func.func @transform_7(%arg0: i32) -> (i32, i32) {
    %c0_i32 = arith.constant 0 : i32
    %c0_i32_0 = arith.constant 0 : i32
    %c0_i32_1 = arith.constant 0 : i32
    return %c0_i32, %c0_i32_0 : i32, i32
  }
  func.func @transform_8(%arg0: i32) -> (i32, i32) {
    %c0_i32 = arith.constant 0 : i32
    %c0_i32_0 = arith.constant 0 : i32
    %c0_i32_1 = arith.constant 0 : i32
    return %c0_i32, %c0_i32_0 : i32, i32
  }
  func.func @transform_9(%arg0: i32) -> (i32, i32) {
    %c0_i32 = arith.constant 0 : i32
    %c0_i32_0 = arith.constant 0 : i32
    %c0_i32_1 = arith.constant 0 : i32
    return %c0_i32, %c0_i32_0 : i32, i32
  }
  func.func @transform_10(%arg0: i32) -> (i32, i32) {
    %c0_i32 = arith.constant 0 : i32
    %c0_i32_0 = arith.constant 0 : i32
    return %arg0, %c0_i32 : i32, i32
  }
}

</mosaic_0001>

<bundles_post_ra>
// kernel: tpu_custom_call.1
= control target key start
LH: loop header
LB: loop body
LE: loop exit
PB: predicated region body
PF: predicated region fallthrough
CT: control target
= control target key end

     0   :  { %v5319_v2 = vmov 0   ;;  %vm1256_vm0 = vcmask 130048   ;;  %s5308_s0 = inlined_call_operand.vmem [shape: f32[16,784], index: 0, kind: input, shape index: {}]   ;;  %s5309_s1 = inlined_call_operand.vmem [shape: f32[16,784], index: 1, kind: input, shape index: {}]   ;;  %s5310_s2 = inlined_call_operand.vmem [shape: bf16[784,392], index: 2, kind: input, shape index: {}]   ;;  %s5311_s3 = inlined_call_operand.vmem [shape: f32[1,392], index: 3, kind: input, shape index: {}]   ;;  %s5312_s4 = inlined_call_operand.vmem [shape: f32[1,392], index: 4, kind: input, shape index: {}]   ;;  %s5313_s5 = inlined_call_operand.vmem [shape: bf16[392,128], index: 5, kind: input, shape index: {}]   ;;  %s5314_s6 = inlined_call_operand.vmem [shape: bf16[392,128], index: 6, kind: input, shape index: {}]   ;;  %s5315_s7 = inlined_call_operand.vmem [shape: f32[1,128], index: 7, kind: input, shape index: {}]   ;;  %s5316_s8 = inlined_call_operand.vmem [shape: bf16[128,128], index: 8, kind: input, shape index: {}]   ;;  %s5317_s9 = inlined_call_operand.vmem [shape: f32[1,128], index: 9, kind: input, shape index: {}]   ;;  %s5318_s10 = inlined_call_operand.hbm [shape: f32[16,128], index: 10, kind: output, shape index: {}]  }
   0x1   :  { %v3135_v0 = vld [vmem:[%s5310_s2 + $0x4] ss:$16 sps:$4 sm:$0xff]   ;;  %1421 = vmatprep.mubr.bf16.mxu1 %v5319_v2  ;;  %v3139_v3 = vld [vmem:[%s5310_s2] ss:$16 sps:$4 sm:$0xff]   ;;  %v246_v7 = vld [vmem:[%s5308_s0 + $0x68] sm:$0xff] }
   0x2   :  { %v3137_v1 = vld [vmem:[%s5310_s2 + $0x604] ss:$16 sps:$4 sm:$0xff]   ;;  %1260 = vmatprep.subr.bf16.mxu0 %v3135_v0  ;;  %v3140_v4 = vld [vmem:[%s5310_s2 + $0x600] ss:$16 sps:$4 sm:$0xff]   ;;  %v3143_v9 = vld [vmem:[%s5310_s2 + $0x8] ss:$16 sps:$4 sm:$0xff]  }
   0x3   :  { %1389 = vmatprep.subr.bf16.mxu1 %v3137_v1  ;;  %v3141_v5 = vld [vmem:[%s5310_s2 + $0x24] ss:$16 sps:$4 sm:$0xff]   ;;  %1261 = vmatpush1.bf16.msra.mxu0 %v3139_v3  ;;  %v3145_v10 = vld [vmem:[%s5310_s2 + $0xc] ss:$16 sps:$4 sm:$0xff]   ;;  %v3146_v11 = vld [vmem:[%s5310_s2 + $0x20] ss:$16 sps:$4 sm:$0xff]  }
   0x4   :  { %v239_v6 = vld [vmem:[%s5308_s0 + $0x30] sm:$0xff]  ;;  %1390 = vmatpush1.bf16.msra.mxu1 %v3140_v4  ;;  %1262 = vmatprep.subr.bf16.mxu0 %v3141_v5  ;;  %v3149_v13 = vld [vmem:[%s5310_s2 + $0x28] ss:$16 sps:$4 sm:$0xff]   ;;  %v3151_v14 = vld [vmem:[%s5310_s2 + $0x2c] ss:$16 sps:$4 sm:$0xff]  }
   0x5   :  { %v3692_v8 = vpack.c.bf16 %v246_v7, %v239_v6  ;;  %v3147_v12 = vld [vmem:[%s5310_s2 + $0x44] ss:$16 sps:$4 sm:$0xff]   ;;  %1432 = vmatprep.subr.bf16.mxu1 %v3145_v10  ;;  %v3152_v15 = vld [vmem:[%s5310_s2 + $0x40] ss:$16 sps:$4 sm:$0xff]   ;;  %v3157_v17 = vld [vmem:[%s5310_s2 + $0x4c] ss:$16 sps:$4 sm:$0xff]  }
   0x6   :  { %v3153_v16 = vld [vmem:[%s5310_s2 + $0x64] ss:$16 sps:$4 sm:$0xff]   ;;  %v3155_v18 = vld [vmem:[%s5310_s2 + $0x48] ss:$16 sps:$4 sm:$0xff]   ;;  %v3158_v19 = vld [vmem:[%s5310_s2 + $0x60] ss:$16 sps:$4 sm:$0xff]  }
   0x7   :  { %2926 = vmatmul.mubr.msk.bf16.vlgmr.msra.gmra.mrb[0].mxu1 %vm1256_vm0, %v3692_v8  ;;  %1263 = vmatpush1.bf16.msra.mxu0 %v3146_v11  ;;  %v3159_v20 = vld [vmem:[%s5310_s2 + $0x84] ss:$16 sps:$4 sm:$0xff]   ;;  %v3163_v21 = vld [vmem:[%s5310_s2 + $0x6c] ss:$16 sps:$4 sm:$0xff]   ;;  %v3161_v22 = vld [vmem:[%s5310_s2 + $0x68] ss:$16 sps:$4 sm:$0xff]  }
   0x8   :  { %1433 = vmatpush1.bf16.msra.mxu1 %v3143_v9  ;;  %1264 = vmatprep.subr.bf16.mxu0 %v3147_v12  ;;  %v3164_v23 = vld [vmem:[%s5310_s2 + $0x80] ss:$16 sps:$4 sm:$0xff]   ;;  %v3165_v24 = vld [vmem:[%s5310_s2 + $0xa4] ss:$16 sps:$4 sm:$0xff]   ;;  %v3169_v25 = vld [vmem:[%s5310_s2 + $0x8c] ss:$16 sps:$4 sm:$0xff]  }
   0x9   :  { %1434 = vmatprep.subr.bf16.mxu1 %v3151_v14  ;;  %v3167_v26 = vld [vmem:[%s5310_s2 + $0x88] ss:$16 sps:$4 sm:$0xff]   ;;  %v3170_v27 = vld [vmem:[%s5310_s2 + $0xa0] ss:$16 sps:$4 sm:$0xff]   ;;  %v3171_v28 = vld [vmem:[%s5310_s2 + $0xc4] ss:$16 sps:$4 sm:$0xff]  }
   0xa   :  { %v3175_v29 = vld [vmem:[%s5310_s2 + $0xac] ss:$16 sps:$4 sm:$0xff]   ;;  %v3173_v30 = vld [vmem:[%s5310_s2 + $0xa8] ss:$16 sps:$4 sm:$0xff]   ;;  %v3176_v31 = vld [vmem:[%s5310_s2 + $0xc0] ss:$16 sps:$4 sm:$0xff]  }
   0xb   :  { %1265 = vmatpush1.bf16.msra.mxu0 %v3152_v15  ;;  %v3177_v32 = vld [vmem:[%s5310_s2 + $0xe4] ss:$16 sps:$4 sm:$0xff]   ;;  %v3181_v33 = vld [vmem:[%s5310_s2 + $0xcc] ss:$16 sps:$4 sm:$0xff]   ;;  %v3179_v34 = vld [vmem:[%s5310_s2 + $0xc8] ss:$16 sps:$4 sm:$0xff]  }
   0xc   :  { %1435 = vmatpush1.bf16.msra.mxu1 %v3149_v13  ;;  %1266 = vmatprep.subr.bf16.mxu0 %v3153_v16  ;;  %v3182_v35 = vld [vmem:[%s5310_s2 + $0xe0] ss:$16 sps:$4 sm:$0xff]   ;;  %v3183_v36 = vld [vmem:[%s5310_s2 + $0x104] ss:$16 sps:$4 sm:$0xff]   ;;  %v3187_v37 = vld [vmem:[%s5310_s2 + $0xec] ss:$16 sps:$4 sm:$0xff]  }
   0xd   :  { %1436 = vmatprep.subr.bf16.mxu1 %v3157_v17  ;;  %v3185_v38 = vld [vmem:[%s5310_s2 + $0xe8] ss:$16 sps:$4 sm:$0xff]   ;;  %v3188_v39 = vld [vmem:[%s5310_s2 + $0x100] ss:$16 sps:$4 sm:$0xff]   ;;  %v3189_v40 = vld [vmem:[%s5310_s2 + $0x124] ss:$16 sps:$4 sm:$0xff]  }
   0xe   :  { %v3193_v41 = vld [vmem:[%s5310_s2 + $0x10c] ss:$16 sps:$4 sm:$0xff]   ;;  %v3191_v42 = vld [vmem:[%s5310_s2 + $0x108] ss:$16 sps:$4 sm:$0xff]   ;;  %v3194_v43 = vld [vmem:[%s5310_s2 + $0x120] ss:$16 sps:$4 sm:$0xff]  }
   0xf   :  { %1267 = vmatpush1.bf16.msra.mxu0 %v3158_v19  ;;  %v3195_v44 = vld [vmem:[%s5310_s2 + $0x144] ss:$16 sps:$4 sm:$0xff]   ;;  %v3199_v45 = vld [vmem:[%s5310_s2 + $0x12c] ss:$16 sps:$4 sm:$0xff]   ;;  %v3197_v46 = vld [vmem:[%s5310_s2 + $0x128] ss:$16 sps:$4 sm:$0xff]  }
  0x10   :  { %1437 = vmatpush1.bf16.msra.mxu1 %v3155_v18  ;;  %1268 = vmatprep.subr.bf16.mxu0 %v3159_v20  ;;  %v3200_v47 = vld [vmem:[%s5310_s2 + $0x140] ss:$16 sps:$4 sm:$0xff]   ;;  %v3201_v48 = vld [vmem:[%s5310_s2 + $0x164] ss:$16 sps:$4 sm:$0xff]   ;;  %v3205_v49 = vld [vmem:[%s5310_s2 + $0x14c] ss:$16 sps:$4 sm:$0xff]  }
  0x11   :  { %1438 = vmatprep.subr.bf16.mxu1 %v3163_v21  ;;  %v3203_v50 = vld [vmem:[%s5310_s2 + $0x148] ss:$16 sps:$4 sm:$0xff]   ;;  %v3206_v51 = vld [vmem:[%s5310_s2 + $0x160] ss:$16 sps:$4 sm:$0xff]   ;;  %v3207_v54 = vld [vmem:[%s5310_s2 + $0x184] ss:$16 sps:$4 sm:$0xff]  }
  0x12   :  { %v234_v52 = vld [vmem:[%s5308_s0 + $0x8] sm:$0xff]  ;;  %v241_v53 = vld [vmem:[%s5308_s0 + $0x40] sm:$0xff]  ;;  %v240_v10 = vld [vmem:[%s5308_s0 + $0x38] sm:$0xff] }
  0x13   :  { %1269 = vmatpush1.bf16.msra.mxu0 %v3164_v23  ;;  %v248_v55 = vpack.c.bf16 %v241_v53, %v234_v52  ;;  %v3211_v56 = vld [vmem:[%s5310_s2 + $0x16c] ss:$16 sps:$4 sm:$0xff]   ;;  %v3209_v57 = vld [vmem:[%s5310_s2 + $0x168] ss:$16 sps:$4 sm:$0xff]   ;;  %v3212_v58 = vld [vmem:[%s5310_s2 + $0x180] ss:$16 sps:$4 sm:$0xff]  }
  0x14   :  { %1439 = vmatpush1.bf16.msra.mxu1 %v3161_v22  ;;  %1270 = vmatprep.subr.bf16.mxu0 %v3165_v24  ;;  %v3213_v59 = vld [vmem:[%s5310_s2 + $0x1a4] ss:$16 sps:$4 sm:$0xff]   ;;  %v3217_v60 = vld [vmem:[%s5310_s2 + $0x18c] ss:$16 sps:$4 sm:$0xff]   ;;  %v3215_v61 = vld [vmem:[%s5310_s2 + $0x188] ss:$16 sps:$4 sm:$0xff]  }
  0x15   :  { %1440 = vmatprep.subr.bf16.mxu1 %v3169_v25  ;;  %1292 = vmatprep.mubr.bf16.mxu0 %v248_v55  ;;  %v3218_v62 = vld [vmem:[%s5310_s2 + $0x1a0] ss:$16 sps:$4 sm:$0xff]   ;;  %v3219_v63 = vld [vmem:[%s5310_s2 + $0x1c4] ss:$16 sps:$4 sm:$0xff]   ;;  %v3223_v0 = vld [vmem:[%s5310_s2 + $0x1ac] ss:$16 sps:$4 sm:$0xff]  }
  0x16   :  { %1464 = vmatprep.mubr.bf16.mxu1 %v248_v55  ;;  %v3221_v1 = vld [vmem:[%s5310_s2 + $0x1a8] ss:$16 sps:$4 sm:$0xff]   ;;  %v3224_v3 = vld [vmem:[%s5310_s2 + $0x1c0] ss:$16 sps:$4 sm:$0xff]   ;;  %v3225_v4 = vld [vmem:[%s5310_s2 + $0x1e4] ss:$16 sps:$4 sm:$0xff]  }
  0x17   :  { %1271 = vmatpush1.bf16.msra.mxu0 %v3170_v27  ;;  %v3229_v5 = vld [vmem:[%s5310_s2 + $0x1cc] ss:$16 sps:$4 sm:$0xff]   ;;  %v3227_v6 = vld [vmem:[%s5310_s2 + $0x1c8] ss:$16 sps:$4 sm:$0xff]   ;;  %v3230_v7 = vld [vmem:[%s5310_s2 + $0x1e0] ss:$16 sps:$4 sm:$0xff]  }
  0x18   :  { %1441 = vmatpush1.bf16.msra.mxu1 %v3167_v26  ;;  %1272 = vmatprep.subr.bf16.mxu0 %v3171_v28  ;;  %v233_v9 = vld [vmem:[%s5308_s0] sm:$0xff]  ;;  %v3236_v12 = vld [vmem:[%s5310_s2 + $0x1ec] ss:$16 sps:$4 sm:$0xff]   ;;  %v3234_v15 = vld [vmem:[%s5310_s2 + $0x1e8] ss:$16 sps:$4 sm:$0xff]  }
  0x19   :  { %1442 = vmatprep.subr.bf16.mxu1 %v3175_v29  ;;  %v3233_v11 = vld [vmem:[%s5310_s2 + $0x204] ss:$16 sps:$4 sm:$0xff]   ;;  %v247_v13 = vpack.c.bf16 %v240_v10, %v233_v9  ;;  %v3231_v14 = vld [vmem:[%s5310_s2 + $0x200] ss:$16 sps:$4 sm:$0xff]   ;;  %v3242_v17 = vld [vmem:[%s5310_s2 + $0x20c] ss:$16 sps:$4 sm:$0xff]  }
  0x1a   :  { %v3239_v16 = vld [vmem:[%s5310_s2 + $0x224] ss:$16 sps:$4 sm:$0xff]   ;;  %v3237_v18 = vld [vmem:[%s5310_s2 + $0x220] ss:$16 sps:$4 sm:$0xff]   ;;  %v3240_v19 = vld [vmem:[%s5310_s2 + $0x208] ss:$16 sps:$4 sm:$0xff]  }
  0x1b   :  { %1273 = vmatpush1.bf16.msra.mxu0 %v3176_v31  ;;  %v3245_v20 = vld [vmem:[%s5310_s2 + $0x244] ss:$16 sps:$4 sm:$0xff]   ;;  %v3248_v21 = vld [vmem:[%s5310_s2 + $0x22c] ss:$16 sps:$4 sm:$0xff]   ;;  %v3243_v22 = vld [vmem:[%s5310_s2 + $0x240] ss:$16 sps:$4 sm:$0xff]  }
  0x1c   :  { %1443 = vmatpush1.bf16.msra.mxu1 %v3173_v30  ;;  %1274 = vmatprep.subr.bf16.mxu0 %v3177_v32  ;;  %v3246_v23 = vld [vmem:[%s5310_s2 + $0x228] ss:$16 sps:$4 sm:$0xff]   ;;  %v3251_v24 = vld [vmem:[%s5310_s2 + $0x264] ss:$16 sps:$4 sm:$0xff]   ;;  %v3254_v25 = vld [vmem:[%s5310_s2 + $0x24c] ss:$16 sps:$4 sm:$0xff]  }
  0x1d   :  { %1444 = vmatprep.subr.bf16.mxu1 %v3181_v33  ;;  %v3249_v26 = vld [vmem:[%s5310_s2 + $0x260] ss:$16 sps:$4 sm:$0xff]   ;;  %v3252_v27 = vld [vmem:[%s5310_s2 + $0x248] ss:$16 sps:$4 sm:$0xff]   ;;  %v3257_v28 = vld [vmem:[%s5310_s2 + $0x284] ss:$16 sps:$4 sm:$0xff]  }
  0x1e   :  { %v3260_v29 = vld [vmem:[%s5310_s2 + $0x26c] ss:$16 sps:$4 sm:$0xff]   ;;  %v3255_v30 = vld [vmem:[%s5310_s2 + $0x280] ss:$16 sps:$4 sm:$0xff]   ;;  %v3258_v31 = vld [vmem:[%s5310_s2 + $0x268] ss:$16 sps:$4 sm:$0xff]  }
  0x1f   :  { %1275 = vmatpush1.bf16.msra.mxu0 %v3182_v35  ;;  %v3263_v32 = vld [vmem:[%s5310_s2 + $0x2a4] ss:$16 sps:$4 sm:$0xff]   ;;  %v3266_v33 = vld [vmem:[%s5310_s2 + $0x28c] ss:$16 sps:$4 sm:$0xff]   ;;  %v3264_v35 = vld [vmem:[%s5310_s2 + $0x288] ss:$16 sps:$4 sm:$0xff]  }
  0x20   :  { %1445 = vmatpush1.bf16.msra.mxu1 %v3179_v34  ;;  %1276 = vmatprep.subr.bf16.mxu0 %v3183_v36  ;;  %v3261_v34 = vld [vmem:[%s5310_s2 + $0x2a0] ss:$16 sps:$4 sm:$0xff]   ;;  %v3269_v36 = vld [vmem:[%s5310_s2 + $0x2c4] ss:$16 sps:$4 sm:$0xff]   ;;  %v3290_v52 = vld [vmem:[%s5310_s2 + $0x30c] ss:$16 sps:$4 sm:$0xff]  }
  0x21   :  { %1446 = vmatprep.subr.bf16.mxu1 %v3187_v37  ;;  %v3272_v37 = vld [vmem:[%s5310_s2 + $0x2ac] ss:$16 sps:$4 sm:$0xff]   ;;  %v4019_v53 = vld [vmem:[%s5310_s2 + $0x320] ss:$16 sps:$4 sm:$0xff]   ;;  %v4030_v55 = vld [vmem:[%s5310_s2 + $0x344] ss:$16 sps:$4 sm:$0xff]  }
  0x22   :  { %v4126_v9 = vld [vmem:[%s5310_s2 + $0x3c4] ss:$16 sps:$4 sm:$0xff]   ;;  %v4131_v10 = vld [vmem:[%s5310_s2 + $0x3ac] ss:$16 sps:$4 sm:$0xff]  }
  0x23   :  { %1277 = vmatpush1.bf16.msra.mxu0 %v3188_v39  ;;  %v3270_v39 = vld [vmem:[%s5310_s2 + $0x2a8] ss:$16 sps:$4 sm:$0xff]   ;;  %v4374_v2 = vld [vmem:[%s5310_s2 + $0x504] ss:$16 sps:$4 sm:$0xff]  }
  0x24   :  { %1447 = vmatpush1.bf16.msra.mxu1 %v3185_v38  ;;  %1278 = vmatprep.subr.bf16.mxu0 %v3189_v40  ;;  %v3267_v38 = vld [vmem:[%s5310_s2 + $0x2c0] ss:$16 sps:$4 sm:$0xff]   ;;  %v236_v40 = vld [vmem:[%s5308_s0 + $0x18] sm:$0xff]  ;;  %5375 = vst [vmem:[#allocation14_spill] sm:$0xff] %v4374_v2 }
  0x25   :  { %1448 = vmatprep.subr.bf16.mxu1 %v3193_v41  ;;  %v243_v41 = vld [vmem:[%s5308_s0 + $0x50] sm:$0xff] }
  0x27   :  { %1279 = vmatpush1.bf16.msra.mxu0 %v3194_v43  ;;  %v250_v43 = vpack.c.bf16 %v243_v41, %v236_v40  ;;  %v4283_v40 = vld [vmem:[%s5310_s2 + $0x46c] ss:$16 sps:$4 sm:$0xff]   ;;  %v4292_v41 = vld [vmem:[%s5310_s2 + $0x480] ss:$16 sps:$4 sm:$0xff]  }
  0x28   :  { %1449 = vmatpush1.bf16.msra.mxu1 %v3191_v42  ;;  %1280 = vmatprep.subr.bf16.mxu0 %v3195_v44  ;;  %v3275_v42 = vld [vmem:[%s5310_s2 + $0x2e4] ss:$16 sps:$4 sm:$0xff]   ;;  %v3278_v44 = vld [vmem:[%s5310_s2 + $0x2cc] ss:$16 sps:$4 sm:$0xff]   ;;  %5367 = vst [vmem:[#allocation6_spill] sm:$0xff] %v4283_v40 }
  0x29   :  { %1450 = vmatprep.subr.bf16.mxu1 %v3199_v45  ;;  %v3984_v45 = vld [vmem:[%s5310_s2 + $0x2e0] ss:$16 sps:$4 sm:$0xff]  }
  0x2b   :  { %1281 = vmatpush1.bf16.msra.mxu0 %v3200_v47  ;;  %v3992_v47 = vld [vmem:[%s5310_s2 + $0x304] ss:$16 sps:$4 sm:$0xff]  }
  0x2c   :  { %1451 = vmatpush1.bf16.msra.mxu1 %v3197_v46  ;;  %1282 = vmatprep.subr.bf16.mxu0 %v3201_v48  ;;  %v3276_v46 = vld [vmem:[%s5310_s2 + $0x2c8] ss:$16 sps:$4 sm:$0xff]   ;;  %v3284_v48 = vld [vmem:[%s5310_s2 + $0x2ec] ss:$16 sps:$4 sm:$0xff]  }
  0x2d   :  { %1452 = vmatprep.subr.bf16.mxu1 %v3205_v49  ;;  %v4001_v49 = vld [vmem:[%s5310_s2 + $0x300] ss:$16 sps:$4 sm:$0xff]  }
  0x2f   :  { %1283 = vmatpush1.bf16.msra.mxu0 %v3206_v51  ;;  %v4010_v51 = vld [vmem:[%s5310_s2 + $0x324] ss:$16 sps:$4 sm:$0xff]  }
  0x30   :  { %1453 = vmatpush1.bf16.msra.mxu1 %v3203_v50  ;;  %1284 = vmatprep.subr.bf16.mxu0 %v3207_v54  ;;  %v3282_v50 = vld [vmem:[%s5310_s2 + $0x2e8] ss:$16 sps:$4 sm:$0xff]  }
  0x31   :  { %1454 = vmatprep.subr.bf16.mxu1 %v3211_v56  ;;  %v4024_v54 = vld [vmem:[%s5310_s2 + $0x308] ss:$16 sps:$4 sm:$0xff]   ;;  %v4035_v56 = vld [vmem:[%s5310_s2 + $0x32c] ss:$16 sps:$4 sm:$0xff]  }
  0x33   :  { %1285 = vmatpush1.bf16.msra.mxu0 %v3212_v58  ;;  %v4047_v58 = vld [vmem:[%s5310_s2 + $0x328] ss:$16 sps:$4 sm:$0xff]  }
  0x34   :  { %1455 = vmatpush1.bf16.msra.mxu1 %v3209_v57  ;;  %1286 = vmatprep.subr.bf16.mxu0 %v3213_v59  ;;  %v4042_v57 = vld [vmem:[%s5310_s2 + $0x340] ss:$16 sps:$4 sm:$0xff]   ;;  %v4054_v59 = vld [vmem:[%s5310_s2 + $0x364] ss:$16 sps:$4 sm:$0xff]  }
  0x35   :  { %1456 = vmatprep.subr.bf16.mxu1 %v3217_v60  ;;  %v4059_v60 = vld [vmem:[%s5310_s2 + $0x34c] ss:$16 sps:$4 sm:$0xff]  }
  0x37   :  { %1287 = vmatpush1.bf16.msra.mxu0 %v3218_v62  ;;  %v4071_v62 = vld [vmem:[%s5310_s2 + $0x348] ss:$16 sps:$4 sm:$0xff]  }
  0x38   :  { %1457 = vmatpush1.bf16.msra.mxu1 %v3215_v61  ;;  %1288 = vmatprep.subr.bf16.mxu0 %v3219_v63  ;;  %v4066_v61 = vld [vmem:[%s5310_s2 + $0x360] ss:$16 sps:$4 sm:$0xff]   ;;  %v4078_v63 = vld [vmem:[%s5310_s2 + $0x384] ss:$16 sps:$4 sm:$0xff]  }
  0x39   :  { %1458 = vmatprep.subr.bf16.mxu1 %v3223_v0  ;;  %v4083_v0 = vld [vmem:[%s5310_s2 + $0x36c] ss:$16 sps:$4 sm:$0xff]  }
  0x3b   :  { %1289 = vmatpush1.bf16.msra.mxu0 %v3224_v3  ;;  %v4095_v3 = vld [vmem:[%s5310_s2 + $0x368] ss:$16 sps:$4 sm:$0xff]  }
  0x3c   :  { %1459 = vmatpush1.bf16.msra.mxu1 %v3221_v1  ;;  %1290 = vmatprep.subr.bf16.mxu0 %v3225_v4  ;;  %v4090_v1 = vld [vmem:[%s5310_s2 + $0x380] ss:$16 sps:$4 sm:$0xff]   ;;  %v4102_v4 = vld [vmem:[%s5310_s2 + $0x3a4] ss:$16 sps:$4 sm:$0xff]  }
  0x3d   :  { %1460 = vmatprep.subr.bf16.mxu1 %v3229_v5  ;;  %v4107_v5 = vld [vmem:[%s5310_s2 + $0x38c] ss:$16 sps:$4 sm:$0xff]  }
  0x3f   :  { %1291 = vmatpush1.bf16.msra.mxu0 %v3230_v7  ;;  %v4119_v7 = vld [vmem:[%s5310_s2 + $0x388] ss:$16 sps:$4 sm:$0xff]  }
  0x40   :  { %1461 = vmatpush1.bf16.msra.mxu1 %v3227_v6  ;;  %1303 = vmatprep.subr.bf16.mxu0 %v3233_v11  ;;  %v4114_v6 = vld [vmem:[%s5310_s2 + $0x3a0] ss:$16 sps:$4 sm:$0xff]  }
  0x41   :  { %1462 = vmatprep.subr.bf16.mxu1 %v3236_v12  ;;  %v4138_v11 = vld [vmem:[%s5310_s2 + $0x3c0] ss:$16 sps:$4 sm:$0xff]   ;;  %v4143_v12 = vld [vmem:[%s5310_s2 + $0x3a8] ss:$16 sps:$4 sm:$0xff]  }
  0x42   :  { %1293 = vmatmul.mubr.bf16.vlgmr.msra.gmra.mrb[0].mxu0 %v247_v13 }
  0x43   :  { %1304 = vmatpush1.bf16.msra.mxu0 %v3231_v14  ;;  %1335 = vmatprep.mubr.bf16.mxu0 %v250_v43  ;;  %v4155_v14 = vld [vmem:[%s5310_s2 + $0x3cc] ss:$16 sps:$4 sm:$0xff]  }
  0x44   :  { %1463 = vmatpush1.bf16.msra.mxu1 %v3234_v15  ;;  %1305 = vmatprep.subr.bf16.mxu0 %v3239_v16  ;;  %v4160_v15 = vld [vmem:[%s5310_s2 + $0x3e0] ss:$16 sps:$4 sm:$0xff]   ;;  %v4165_v16 = vld [vmem:[%s5310_s2 + $0x3c8] ss:$16 sps:$4 sm:$0xff]  }
  0x45   :  { %1475 = vmatprep.subr.bf16.mxu1 %v3242_v17  ;;  %v235_v17 = vld [vmem:[%s5308_s0 + $0x10] sm:$0xff] }
  0x47   :  { %1465 = vmatmul.mubr.bf16.vlgmr.msra.gmra.mrb[4].mxu1 %v247_v13  ;;  %1306 = vmatpush1.bf16.msra.mxu0 %v3237_v18  ;;  %v4150_v13 = vld [vmem:[%s5310_s2 + $0x3e4] ss:$16 sps:$4 sm:$0xff]   ;;  %v242_v18 = vld [vmem:[%s5308_s0 + $0x48] sm:$0xff] }
  0x48   :  { %1476 = vmatpush1.bf16.msra.mxu1 %v3240_v19  ;;  %1307 = vmatprep.subr.bf16.mxu0 %v3245_v20  ;;  %v4180_v19 = vld [vmem:[%s5310_s2 + $0x404] ss:$16 sps:$4 sm:$0xff]   ;;  %v4185_v20 = vld [vmem:[%s5310_s2 + $0x3ec] ss:$16 sps:$4 sm:$0xff]  }
  0x49   :  { %1477 = vmatprep.subr.bf16.mxu1 %v3248_v21  ;;  %1507 = vmatprep.mubr.bf16.mxu1 %v250_v43  ;;  %v249_v21 = vpack.c.bf16 %v242_v18, %v235_v17  ;;  %v4302_v43 = vld [vmem:[%s5310_s2 + $0x4a4] ss:$16 sps:$4 sm:$0xff]   ;;  %v4340_v17 = vld [vmem:[%s5310_s2 + $0x4c0] ss:$16 sps:$4 sm:$0xff]   ;;  %v4345_v18 = vld [vmem:[%s5310_s2 + $0x4a8] ss:$16 sps:$4 sm:$0xff]  }
  0x4a   :  { %5372 = vst [vmem:[#allocation11_spill] sm:$0xff] %v4345_v18 }
  0x4b   :  { %1308 = vmatpush1.bf16.msra.mxu0 %v3243_v22  ;;  %v4192_v22 = vld [vmem:[%s5310_s2 + $0x400] ss:$16 sps:$4 sm:$0xff]  }
  0x4c   :  { %1478 = vmatpush1.bf16.msra.mxu1 %v3246_v23  ;;  %1309 = vmatprep.subr.bf16.mxu0 %v3251_v24  ;;  %v4197_v23 = vld [vmem:[%s5310_s2 + $0x3e8] ss:$16 sps:$4 sm:$0xff]   ;;  %v4204_v24 = vld [vmem:[%s5310_s2 + $0x424] ss:$16 sps:$4 sm:$0xff]  }
  0x4d   :  { %1479 = vmatprep.subr.bf16.mxu1 %v3254_v25  ;;  %v4209_v25 = vld [vmem:[%s5310_s2 + $0x40c] ss:$16 sps:$4 sm:$0xff]  }
  0x4f   :  { %1310 = vmatpush1.bf16.msra.mxu0 %v3249_v26  ;;  %v238_v26 = vld [vmem:[%s5308_s0 + $0x28] sm:$0xff] }
  0x50   :  { %1480 = vmatpush1.bf16.msra.mxu1 %v3252_v27  ;;  %1311 = vmatprep.subr.bf16.mxu0 %v3257_v28  ;;  %v245_v27 = vld [vmem:[%s5308_s0 + $0x60] sm:$0xff] }
  0x51   :  { %1481 = vmatprep.subr.bf16.mxu1 %v3260_v29  ;;  %v4222_v28 = vld [vmem:[%s5310_s2 + $0x420] ss:$16 sps:$4 sm:$0xff]   ;;  %v4227_v29 = vld [vmem:[%s5310_s2 + $0x408] ss:$16 sps:$4 sm:$0xff]  }
  0x53   :  { %1312 = vmatpush1.bf16.msra.mxu0 %v3255_v30  ;;  %v252_v30 = vpack.c.bf16 %v245_v27, %v238_v26  ;;  %v4355_v26 = vld [vmem:[%s5310_s2 + $0x4cc] ss:$16 sps:$4 sm:$0xff]   ;;  %v4364_v27 = vld [vmem:[%s5310_s2 + $0x4e0] ss:$16 sps:$4 sm:$0xff]  }
  0x54   :  { %1482 = vmatpush1.bf16.msra.mxu1 %v3258_v31  ;;  %1313 = vmatprep.subr.bf16.mxu0 %v3263_v32  ;;  %v4234_v31 = vld [vmem:[%s5310_s2 + $0x444] ss:$16 sps:$4 sm:$0xff]   ;;  %v4239_v32 = vld [vmem:[%s5310_s2 + $0x42c] ss:$16 sps:$4 sm:$0xff]   ;;  %5373 = vst [vmem:[#allocation12_spill] sm:$0xff] %v4355_v26 }
  0x55   :  { %1483 = vmatprep.subr.bf16.mxu1 %v3266_v33  ;;  %v4246_v33 = vld [vmem:[%s5310_s2 + $0x440] ss:$16 sps:$4 sm:$0xff]  }
  0x57   :  { %1314 = vmatpush1.bf16.msra.mxu0 %v3261_v34  ;;  %v4251_v34 = vld [vmem:[%s5310_s2 + $0x428] ss:$16 sps:$4 sm:$0xff]  }
  0x58   :  { %1484 = vmatpush1.bf16.msra.mxu1 %v3264_v35  ;;  %1315 = vmatprep.subr.bf16.mxu0 %v3269_v36  ;;  %v4256_v35 = vld [vmem:[%s5310_s2 + $0x464] ss:$16 sps:$4 sm:$0xff]   ;;  %v4263_v36 = vld [vmem:[%s5310_s2 + $0x44c] ss:$16 sps:$4 sm:$0xff]  }
  0x59   :  { %1485 = vmatprep.subr.bf16.mxu1 %v3272_v37  ;;  %v4268_v37 = vld [vmem:[%s5310_s2 + $0x460] ss:$16 sps:$4 sm:$0xff]  }
  0x5b   :  { %1316 = vmatpush1.bf16.msra.mxu0 %v3267_v38  ;;  %v4273_v38 = vld [vmem:[%s5310_s2 + $0x448] ss:$16 sps:$4 sm:$0xff]  }
  0x5c   :  { %1486 = vmatpush1.bf16.msra.mxu1 %v3270_v39  ;;  %1317 = vmatprep.subr.bf16.mxu0 %v3275_v42  ;;  %5366 = vst [vmem:[#allocation5_spill] sm:$0xff] %v4273_v38  ;;  %v4278_v39 = vld [vmem:[%s5310_s2 + $0x484] ss:$16 sps:$4 sm:$0xff]   ;;  %v4297_v42 = vld [vmem:[%s5310_s2 + $0x468] ss:$16 sps:$4 sm:$0xff]  }
  0x5d   :  { %1487 = vmatprep.subr.bf16.mxu1 %v3278_v44  ;;  %5368 = vst [vmem:[#allocation7_spill] sm:$0xff] %v4297_v42  ;;  %v4307_v44 = vld [vmem:[%s5310_s2 + $0x48c] ss:$16 sps:$4 sm:$0xff]  }
  0x5e   :  { %5369 = vst [vmem:[#allocation8_spill] sm:$0xff] %v4307_v44 }
  0x5f   :  { %1318 = vmatpush1.bf16.msra.mxu0 %v3984_v45 }
  0x60   :  { %1488 = vmatpush1.bf16.msra.mxu1 %v3276_v46  ;;  %1319 = vmatprep.subr.bf16.mxu0 %v3992_v47  ;;  %v4316_v46 = vld [vmem:[%s5310_s2 + $0x4a0] ss:$16 sps:$4 sm:$0xff]  }
  0x61   :  { %1489 = vmatprep.subr.bf16.mxu1 %v3284_v48  ;;  %v4321_v48 = vld [vmem:[%s5310_s2 + $0x488] ss:$16 sps:$4 sm:$0xff]  }
  0x62   :  { %5370 = vst [vmem:[#allocation9_spill] sm:$0xff] %v4321_v48 }
  0x63   :  { %1320 = vmatpush1.bf16.msra.mxu0 %v4001_v49 }
  0x64   :  { %1490 = vmatpush1.bf16.msra.mxu1 %v3282_v50  ;;  %1321 = vmatprep.subr.bf16.mxu0 %v4010_v51  ;;  %v4326_v50 = vld [vmem:[%s5310_s2 + $0x4c4] ss:$16 sps:$4 sm:$0xff]  }
  0x65   :  { %1491 = vmatprep.subr.bf16.mxu1 %v3290_v52  ;;  %v4331_v52 = vld [vmem:[%s5310_s2 + $0x4ac] ss:$16 sps:$4 sm:$0xff]  }
  0x66   :  { %5371 = vst [vmem:[#allocation10_spill] sm:$0xff] %v4331_v52 }
  0x67   :  { %1322 = vmatpush1.bf16.msra.mxu0 %v4019_v53 }
  0x68   :  { %1492 = vmatpush1.bf16.msra.mxu1 %v4024_v54  ;;  %1323 = vmatprep.subr.bf16.mxu0 %v4030_v55 }
  0x69   :  { %1493 = vmatprep.subr.bf16.mxu1 %v4035_v56 }
  0x6b   :  { %1324 = vmatpush1.bf16.msra.mxu0 %v4042_v57 }
  0x6c   :  { %1494 = vmatpush1.bf16.msra.mxu1 %v4047_v58  ;;  %1325 = vmatprep.subr.bf16.mxu0 %v4054_v59 }
  0x6d   :  { %1495 = vmatprep.subr.bf16.mxu1 %v4059_v60 }
  0x6f   :  { %1326 = vmatpush1.bf16.msra.mxu0 %v4066_v61 }
  0x70   :  { %1496 = vmatpush1.bf16.msra.mxu1 %v4071_v62  ;;  %1327 = vmatprep.subr.bf16.mxu0 %v4078_v63 }
  0x71   :  { %1497 = vmatprep.subr.bf16.mxu1 %v4083_v0 }
  0x73   :  { %1328 = vmatpush1.bf16.msra.mxu0 %v4090_v1 }
  0x74   :  { %1498 = vmatpush1.bf16.msra.mxu1 %v4095_v3  ;;  %1329 = vmatprep.subr.bf16.mxu0 %v4102_v4 }
  0x75   :  { %1499 = vmatprep.subr.bf16.mxu1 %v4107_v5 }
  0x77   :  { %1330 = vmatpush1.bf16.msra.mxu0 %v4114_v6 }
  0x78   :  { %1500 = vmatpush1.bf16.msra.mxu1 %v4119_v7  ;;  %1331 = vmatprep.subr.bf16.mxu0 %v4126_v9 }
  0x79   :  { %1501 = vmatprep.subr.bf16.mxu1 %v4131_v10 }
  0x7b   :  { %1332 = vmatpush1.bf16.msra.mxu0 %v4138_v11 }
  0x7c   :  { %1502 = vmatpush1.bf16.msra.mxu1 %v4143_v12  ;;  %1333 = vmatprep.subr.bf16.mxu0 %v4150_v13 }
  0x7d   :  { %1503 = vmatprep.subr.bf16.mxu1 %v4155_v14 }
  0x7f   :  { %1334 = vmatpush1.bf16.msra.mxu0 %v4160_v15 }
  0x80   :  { %1504 = vmatpush1.bf16.msra.mxu1 %v4165_v16  ;;  %1346 = vmatprep.subr.bf16.mxu0 %v4180_v19 }
  0x81   :  { %1505 = vmatprep.subr.bf16.mxu1 %v4185_v20 }
  0x82   :  { %1336 = vmatmul.mubr.bf16.vlgmr.msra.gmra.mrb[0].mxu0 %v249_v21 }
  0x83   :  { %1347 = vmatpush1.bf16.msra.mxu0 %v4192_v22  ;;  %1378 = vmatprep.mubr.bf16.mxu0 %v252_v30 }
  0x84   :  { %1506 = vmatpush1.bf16.msra.mxu1 %v4197_v23  ;;  %1348 = vmatprep.subr.bf16.mxu0 %v4204_v24 }
  0x85   :  { %1518 = vmatprep.subr.bf16.mxu1 %v4209_v25 }
  0x87   :  { %1508 = vmatmul.mubr.bf16.vlgmr.msra.gmra.mrb[4].mxu1 %v249_v21  ;;  %1349 = vmatpush1.bf16.msra.mxu0 %v4222_v28  ;;  %v4350_v21 = vld [vmem:[%s5310_s2 + $0x4e4] ss:$16 sps:$4 sm:$0xff]  }
  0x88   :  { %1519 = vmatpush1.bf16.msra.mxu1 %v4227_v29  ;;  %1350 = vmatprep.subr.bf16.mxu0 %v4234_v31 }
  0x89   :  { %1520 = vmatprep.subr.bf16.mxu1 %v4239_v32  ;;  %1550 = vmatprep.mubr.bf16.mxu1 %v252_v30  ;;  %v4369_v30 = vld [vmem:[%s5310_s2 + $0x4c8] ss:$16 sps:$4 sm:$0xff]  }
  0x8a   :  { %5374 = vst [vmem:[#allocation13_spill] sm:$0xff] %v4369_v30 }
  0x8b   :  { %1351 = vmatpush1.bf16.msra.mxu0 %v4246_v33 }
  0x8c   :  { %1521 = vmatpush1.bf16.msra.mxu1 %v4251_v34  ;;  %1352 = vmatprep.subr.bf16.mxu0 %v4256_v35 }
  0x8d   :  { %1522 = vmatprep.subr.bf16.mxu1 %v4263_v36 }
  0x8f   :  { %1353 = vmatpush1.bf16.msra.mxu0 %v4268_v37 }
  0x90   :  { %1523 = vmatpush1.bf16.msra.mxu1 %v4273_v38  ;;  %1354 = vmatprep.subr.bf16.mxu0 %v4278_v39  ;;  %v4422_v38 = vld [vmem:[%s5310_s2 + $0x544] ss:$16 sps:$4 sm:$0xff]  }
  0x91   :  { %1524 = vmatprep.subr.bf16.mxu1 %v4283_v40  ;;  %v4417_v40 = vld [vmem:[%s5310_s2 + $0x508] ss:$16 sps:$4 sm:$0xff]   ;;  %5383 = vst [vmem:[#allocation22_spill] sm:$0xff] %v4422_v38 }
  0x92   :  { %5382 = vst [vmem:[#allocation21_spill] sm:$0xff] %v4417_v40 }
  0x93   :  { %1355 = vmatpush1.bf16.msra.mxu0 %v4292_v41 }
  0x94   :  { %1525 = vmatpush1.bf16.msra.mxu1 %v4297_v42  ;;  %1356 = vmatprep.subr.bf16.mxu0 %v4302_v43  ;;  %v4398_v42 = vld [vmem:[%s5310_s2 + $0x524] ss:$16 sps:$4 sm:$0xff]  }
  0x95   :  { %1526 = vmatprep.subr.bf16.mxu1 %v4307_v44  ;;  %v4393_v44 = vld [vmem:[%s5310_s2 + $0x4e8] ss:$16 sps:$4 sm:$0xff]   ;;  %5379 = vst [vmem:[#allocation18_spill] sm:$0xff] %v4398_v42 }
  0x96   :  { %5378 = vst [vmem:[#allocation17_spill] sm:$0xff] %v4393_v44 }
  0x97   :  { %1357 = vmatpush1.bf16.msra.mxu0 %v4316_v46 }
  0x98   :  { %1527 = vmatpush1.bf16.msra.mxu1 %v4321_v48  ;;  %1358 = vmatprep.subr.bf16.mxu0 %v4326_v50  ;;  %v4379_v48 = vld [vmem:[%s5310_s2 + $0x4ec] ss:$16 sps:$4 sm:$0xff]  }
  0x99   :  { %1528 = vmatprep.subr.bf16.mxu1 %v4331_v52  ;;  %5376 = vst [vmem:[#allocation15_spill] sm:$0xff] %v4379_v48  ;;  %v4388_v52 = vld [vmem:[%s5310_s2 + $0x500] ss:$16 sps:$4 sm:$0xff]  }
  0x9a   :  { %5377 = vst [vmem:[#allocation16_spill] sm:$0xff] %v4388_v52 }
  0x9b   :  { %1359 = vmatpush1.bf16.msra.mxu0 %v4340_v17 }
  0x9c   :  { %1529 = vmatpush1.bf16.msra.mxu1 %v4345_v18  ;;  %1360 = vmatprep.subr.bf16.mxu0 %v4350_v21  ;;  %v4403_v18 = vld [vmem:[%s5310_s2 + $0x50c] ss:$16 sps:$4 sm:$0xff]  }
  0x9d   :  { %1530 = vmatprep.subr.bf16.mxu1 %v4355_v26  ;;  %5380 = vst [vmem:[#allocation19_spill] sm:$0xff] %v4403_v18  ;;  %v4412_v26 = vld [vmem:[%s5310_s2 + $0x520] ss:$16 sps:$4 sm:$0xff]  }
  0x9e   :  { %5381 = vst [vmem:[#allocation20_spill] sm:$0xff] %v4412_v26 }
  0x9f   :  { %1361 = vmatpush1.bf16.msra.mxu0 %v4364_v27 }
  0xa0   :  { %1531 = vmatpush1.bf16.msra.mxu1 %v4369_v30  ;;  %1362 = vmatprep.subr.bf16.mxu0 %v4374_v2  ;;  %v4427_v30 = vld [vmem:[%s5310_s2 + $0x52c] ss:$16 sps:$4 sm:$0xff]   ;;  %v4441_v2 = vld [vmem:[%s5310_s2 + $0x528] ss:$16 sps:$4 sm:$0xff]  }
  0xa1   :  { %1532 = vmatprep.subr.bf16.mxu1 %v4379_v48  ;;  %5384 = vst [vmem:[#allocation23_spill] sm:$0xff] %v4427_v30  ;;  %v4436_v48 = vld [vmem:[%s5310_s2 + $0x540] ss:$16 sps:$4 sm:$0xff]   ;;  %5386 = vst [vmem:[#allocation25_spill] sm:$0xff] %v4441_v2 }
  0xa2   :  { %5385 = vst [vmem:[#allocation24_spill] sm:$0xff] %v4436_v48 }
  0xa3   :  { %1363 = vmatpush1.bf16.msra.mxu0 %v4388_v52  ;;  %v4446_v52 = vld [vmem:[%s5310_s2 + $0x564] ss:$16 sps:$4 sm:$0xff]  }
  0xa4   :  { %1533 = vmatpush1.bf16.msra.mxu1 %v4393_v44  ;;  %1364 = vmatprep.subr.bf16.mxu0 %v4398_v42  ;;  %5387 = vst [vmem:[#allocation26_spill] sm:$0xff] %v4446_v52  ;;  %v4451_v44 = vld [vmem:[%s5310_s2 + $0x54c] ss:$16 sps:$4 sm:$0xff]   ;;  %v4465_v42 = vld [vmem:[%s5310_s2 + $0x548] ss:$16 sps:$4 sm:$0xff]  }
  0xa5   :  { %1534 = vmatprep.subr.bf16.mxu1 %v4403_v18  ;;  %5388 = vst [vmem:[#allocation27_spill] sm:$0xff] %v4451_v44  ;;  %v4460_v18 = vld [vmem:[%s5310_s2 + $0x560] ss:$16 sps:$4 sm:$0xff]   ;;  %5390 = vst [vmem:[#allocation29_spill] sm:$0xff] %v4465_v42 }
  0xa6   :  { %5389 = vst [vmem:[#allocation28_spill] sm:$0xff] %v4460_v18 }
  0xa7   :  { %1365 = vmatpush1.bf16.msra.mxu0 %v4412_v26  ;;  %v4470_v26 = vld [vmem:[%s5310_s2 + $0x584] ss:$16 sps:$4 sm:$0xff]  }
  0xa8   :  { %1535 = vmatpush1.bf16.msra.mxu1 %v4417_v40  ;;  %1366 = vmatprep.subr.bf16.mxu0 %v4422_v38  ;;  %5391 = vst [vmem:[#allocation30_spill] sm:$0xff] %v4470_v26  ;;  %v4475_v40 = vld [vmem:[%s5310_s2 + $0x56c] ss:$16 sps:$4 sm:$0xff]  }
  0xa9   :  { %1536 = vmatprep.subr.bf16.mxu1 %v4427_v30  ;;  %5392 = vst [vmem:[#allocation31_spill] sm:$0xff] %v4475_v40 }
  0xab   :  { %1367 = vmatpush1.bf16.msra.mxu0 %v4436_v48 }
  0xac   :  { %1537 = vmatpush1.bf16.msra.mxu1 %v4441_v2  ;;  %1368 = vmatprep.subr.bf16.mxu0 %v4446_v52 }
  0xad   :  { %1538 = vmatprep.subr.bf16.mxu1 %v4451_v44 }
  0xae   :  { %15 = vsyncpa [#allocation3], 0  ;;  %v4486_v30 = vld [vmem:[%s5310_s2 + $0x580] ss:$16 sps:$4 sm:$0xff]   ;;  %v4491_v48 = vld [vmem:[%s5310_s2 + $0x568] ss:$16 sps:$4 sm:$0xff]  }
  0xaf   :  { %1369 = vmatpush1.bf16.msra.mxu0 %v4460_v18  ;;  %5393 = vst [vmem:[#allocation32_spill] sm:$0xff] %v4486_v30  ;;  %5394 = vst [vmem:[#allocation33_spill] sm:$0xff] %v4491_v48  ;;  %v4498_v44 = vld [vmem:[%s5310_s2 + $0x5a4] ss:$16 sps:$4 sm:$0xff]   ;;  %v4510_v2 = vld [vmem:[%s5310_s2 + $0x5a0] ss:$16 sps:$4 sm:$0xff]  }
  0xb0   :  { %1539 = vmatpush1.bf16.msra.mxu1 %v4465_v42  ;;  %1370 = vmatprep.subr.bf16.mxu0 %v4470_v26  ;;  %5395 = vst [vmem:[#allocation34_spill] sm:$0xff] %v4498_v44  ;;  %v4503_v42 = vld [vmem:[%s5310_s2 + $0x58c] ss:$16 sps:$4 sm:$0xff]   ;;  %5397 = vst [vmem:[#allocation36_spill] sm:$0xff] %v4510_v2  ;;  %v4556_v26 = vld [vmem:[%s5310_s2 + $0x5e0] ss:$16 sps:$4 sm:$0xff]  }
  0xb1   :  { %1540 = vmatprep.subr.bf16.mxu1 %v4475_v40  ;;  %5396 = vst [vmem:[#allocation35_spill] sm:$0xff] %v4503_v42  ;;  %v4515_v40 = vld [vmem:[%s5310_s2 + $0x588] ss:$16 sps:$4 sm:$0xff]   ;;  %5404 = vst [vmem:[#allocation43_spill] sm:$0xff] %v4556_v26  ;;  %v1612_v38 = vld [vmem:[%s5309_s1 + $0x40] sm:$0xff]  ;;  %vm2267_vm1 = vcmask 1043456  }
  0xb2   :  { %5398 = vst [vmem:[#allocation37_spill] sm:$0xff] %v4515_v40  ;;  %v244_v18 = vld [vmem:[%s5308_s0 + $0x58] sm:$0xff]  ;;  %v1605_v52 = vld [vmem:[%s5309_s1 + $0x8] sm:$0xff]  ;;  %vm2263_vm2 = vcmask 64512   ;;  %vm3611_vm3 = vmmov 0   ;;  %s3612_s22 = smov [#allocation2]  }
  0xb3   :  { %1371 = vmatpush1.bf16.msra.mxu0 %v4486_v30  ;;  %v4522_v30 = vld [vmem:[%s5310_s2 + $0x5c4] ss:$16 sps:$4 sm:$0xff]   ;;  %s2719_s23 = sshll.u32 %s3612_s22, 4  ;;  %s2720_s23 = int_to_ptr.vmem [resolvable:$true] %s2719_s23 }
  0xb4   :  { %1541 = vmatpush1.bf16.msra.mxu1 %v4491_v48  ;;  %1372 = vmatprep.subr.bf16.mxu0 %v4498_v44  ;;  %5399 = vst [vmem:[#allocation38_spill] sm:$0xff] %v4522_v30  ;;  %v4527_v48 = vld [vmem:[%s5310_s2 + $0x5ac] ss:$16 sps:$4 sm:$0xff]   ;;  %v4534_v44 = vld [vmem:[%s5310_s2 + $0x5c0] ss:$16 sps:$4 sm:$0xff]   ;;  %p3590_p1 = scmp.lt.s32.totalorder %s2720_s23, %s2720_s23 }
  0xb5   :  { %1542 = vmatprep.subr.bf16.mxu1 %v4503_v42  ;;  %5400 = vst [vmem:[#allocation39_spill] sm:$0xff] %v4527_v48  ;;  %5401 = vst [vmem:[#allocation40_spill] sm:$0xff] %v4534_v44  ;;  %v4539_v42 = vld [vmem:[%s5310_s2 + $0x5a8] ss:$16 sps:$4 sm:$0xff]  }
  0xb6   :  { %5402 = vst [vmem:[#allocation41_spill] sm:$0xff] %v4539_v42 }
  0xb7   :  { %1373 = vmatpush1.bf16.msra.mxu0 %v4510_v2  ;;  %v4546_v2 = vld [vmem:[%s5310_s2 + $0x5e4] ss:$16 sps:$4 sm:$0xff]  }
  0xb8   :  { %1543 = vmatpush1.bf16.msra.mxu1 %v4515_v40  ;;  %1374 = vmatprep.subr.bf16.mxu0 %v4522_v30  ;;  %v4551_v40 = vld [vmem:[%s5310_s2 + $0x5cc] ss:$16 sps:$4 sm:$0xff]   ;;  %v237_v30 = vld [vmem:[%s5308_s0 + $0x20] sm:$0xff] }
  0xb9   :  { %1544 = vmatprep.subr.bf16.mxu1 %v4527_v48  ;;  %5403 = vst [vmem:[#allocation42_spill] sm:$0xff] %v4551_v40  ;;  %v4563_v48 = vld [vmem:[%s5310_s2 + $0x5c8] ss:$16 sps:$4 sm:$0xff]  }
  0xba   :  { %5405 = vst [vmem:[#allocation44_spill] sm:$0xff] %v4563_v48 }
  0xbb   :  { %1375 = vmatpush1.bf16.msra.mxu0 %v4534_v44  ;;  %v251_v44 = vpack.c.bf16 %v244_v18, %v237_v30  ;;  %v3487_v18 = vld [vmem:[%s5310_s2 + $0x4] ss:$16 sps:$4 sm:$0xff]   ;;  %v4598_v30 = vld [vmem:[%s5310_s2 + $0x60c] ss:$16 sps:$4 sm:$0xff]  }
  0xbc   :  { %1545 = vmatpush1.bf16.msra.mxu1 %v4539_v42  ;;  %1376 = vmatprep.subr.bf16.mxu0 %v4546_v2  ;;  %v4576_v42 = vld [vmem:[%s5310_s2 + $0x5ec] ss:$16 sps:$4 sm:$0xff]   ;;  %5407 = vst [vmem:[#allocation46_spill] sm:$0xff] %v4598_v30 }
  0xbd   :  { %1546 = vmatprep.subr.bf16.mxu1 %v4551_v40  ;;  %5406 = vst [vmem:[#allocation45_spill] sm:$0xff] %v4576_v42  ;;  %v4589_v40 = vld [vmem:[%s5310_s2 + $0x5e8] ss:$16 sps:$4 sm:$0xff]  }
  0xbf   :  { %1377 = vmatpush1.bf16.msra.mxu0 %v4556_v26  ;;  %v1619_v26 = vpack.c.bf16 %v1612_v38, %v1605_v52  ;;  %v3490_v38 = vld [vmem:[%s5310_s2 + $0x20] ss:$16 sps:$4 sm:$0xff]   ;;  %v5409_v52 = vmov 0  }
  0xc0   :  { %1547 = vmatpush1.bf16.msra.mxu1 %v4563_v48  ;;  %1650 = vmatprep.subr.bf16.mxu0 %v3487_v18  ;;  %v3488_v48 = vld [vmem:[%s5310_s2] ss:$16 sps:$4 sm:$0xff]   ;;  %v3489_v18 = vld [vmem:[%s5310_s2 + $0x24] ss:$16 sps:$4 sm:$0xff]  }
  0xc1   :  { %1548 = vmatprep.subr.bf16.mxu1 %v4576_v42  ;;  %v4607_v42 = vld [vmem:[%s5310_s2 + $0x608] ss:$16 sps:$4 sm:$0xff]  }
  0xc2   :  { %1379 = vmatmul.mubr.bf16.vlgmr.msra.gmra.mrb[0].mxu0 %v251_v44  ;;  %5408 = vst [vmem:[#allocation47_spill] sm:$0xff] %v4607_v42 }
  0xc3   :  { %1651 = vmatpush1.bf16.msra.mxu0 %v3488_v48  ;;  %1682 = vmatprep.mubr.bf16.mxu0 %v1619_v26  ;;  %v3491_v48 = vld [vmem:[%s5310_s2 + $0x44] ss:$16 sps:$4 sm:$0xff]  }
  0xc4   :  { %1549 = vmatpush1.bf16.msra.mxu1 %v4589_v40  ;;  %1652 = vmatprep.subr.bf16.mxu0 %v3489_v18  ;;  %v3492_v18 = vld [vmem:[%s5310_s2 + $0x604] ss:$16 sps:$4 sm:$0xff]  }
  0xc5   :  { %1561 = vmatprep.subr.bf16.mxu1 %v4598_v30  ;;  %v3502_v30 = vld [vmem:[%s5310_s2 + $0xc4] ss:$16 sps:$4 sm:$0xff]  }
  0xc7   :  { %1551 = vmatmul.mubr.bf16.vlgmr.msra.gmra.mrb[4].mxu1 %v251_v44  ;;  %1653 = vmatpush1.bf16.msra.mxu0 %v3490_v38  ;;  %v3493_v44 = vld [vmem:[%s5310_s2 + $0x40] ss:$16 sps:$4 sm:$0xff]   ;;  %v3494_v38 = vld [vmem:[%s5310_s2 + $0x64] ss:$16 sps:$4 sm:$0xff]  }
  0xc8   :  { %1562 = vmatpush1.bf16.msra.mxu1 %v4607_v42  ;;  %1654 = vmatprep.subr.bf16.mxu0 %v3491_v48  ;;  %v3495_v48 = vld [vmem:[%s5310_s2 + $0x60] ss:$16 sps:$4 sm:$0xff]   ;;  %v3496_v42 = vld [vmem:[%s5310_s2 + $0x84] ss:$16 sps:$4 sm:$0xff]  }
  0xc9   :  { %1593 = vmatprep.mubr.bf16.mxu1 %v5409_v52  ;;  %1779 = vmatprep.subr.bf16.mxu1 %v3492_v18  ;;  %v3497_v18 = vld [vmem:[%s5310_s2 + $0x80] ss:$16 sps:$4 sm:$0xff]  }
  0xcb   :  { %1655 = vmatpush1.bf16.msra.mxu0 %v3493_v44  ;;  %v3498_v44 = vld [vmem:[%s5310_s2 + $0x600] ss:$16 sps:$4 sm:$0xff]  }
  0xcc   :  { %1656 = vmatprep.subr.bf16.mxu0 %v3494_v38  ;;  %v1610_v38 = vld [vmem:[%s5309_s1 + $0x30] sm:$0xff] }
  0xcf   :  { %1657 = vmatpush1.bf16.msra.mxu0 %v3495_v48  ;;  %v3500_v48 = vld [vmem:[%s5310_s2 + $0xc] ss:$16 sps:$4 sm:$0xff]  }
  0xd0   :  { %1658 = vmatprep.subr.bf16.mxu0 %v3496_v42  ;;  %v1617_v42 = vld [vmem:[%s5309_s1 + $0x68] sm:$0xff] }
  0xd3   :  { %2927 = vmatmul.mubr.msk.bf16.vlgmr.msra.gmra.mrb[4].mxu1 %vm1256_vm0, %v3692_v8  ;;  %1659 = vmatpush1.bf16.msra.mxu0 %v3497_v18  ;;  %v3499_v8 = vld [vmem:[%s5310_s2 + $0xa4] ss:$16 sps:$4 sm:$0xff]   ;;  %v4657_v18 = vpack.c.bf16 %v1617_v42, %v1610_v38  ;;  %v3503_v38 = vld [vmem:[%s5310_s2 + $0x8] ss:$16 sps:$4 sm:$0xff]  }
  0xd4   :  { %1780 = vmatpush1.bf16.msra.mxu1 %v3498_v44  ;;  %1660 = vmatprep.subr.bf16.mxu0 %v3499_v8  ;;  %v3501_v44 = vld [vmem:[%s5310_s2 + $0xa0] ss:$16 sps:$4 sm:$0xff]  }
  0xd5   :  { %1811 = vmatprep.mubr.bf16.mxu1 %v5409_v52  ;;  %1822 = vmatprep.subr.bf16.mxu1 %v3500_v48  ;;  %5410 = vst [vmem:[#allocation48_spill] sm:$0xff] %v4657_v18  ;;  %v3504_v48 = vld [vmem:[%s5310_s2 + $0xc0] ss:$16 sps:$4 sm:$0xff]  }
  0xd7   :  { %1661 = vmatpush1.bf16.msra.mxu0 %v3501_v44  ;;  %v3505_v44 = vld [vmem:[%s5310_s2 + $0x2c] ss:$16 sps:$4 sm:$0xff]  }
  0xd8   :  { %1662 = vmatprep.subr.bf16.mxu0 %v3502_v30 }
  0xda   :  { %v4665_v8 = vpop.f32.mrb[0].mxu1 }
  0xdb   :  { %v4667_v52 = vpop.f32.mrb[1].mxu1  ;;  %2928 = vmatmul.mubr.msk.bf16.vlgmr.msra.gmra.mrb[8].mxu1 %vm1256_vm0, %v4657_v18  ;;  %1663 = vmatpush1.bf16.msra.mxu0 %v3504_v48  ;;  %v3506_v18 = vld [vmem:[%s5310_s2 + $0xe4] ss:$16 sps:$4 sm:$0xff]   ;;  %v3508_v48 = vld [vmem:[%s5310_s2 + $0xe0] ss:$16 sps:$4 sm:$0xff]  }
  0xdc   :  { %5411 = vst [vmem:[#allocation49_spill] sm:$0xff] %v4667_v52  ;;  %1823 = vmatpush1.bf16.msra.mxu1 %v3503_v38  ;;  %v4674_v42 = vpop.f32.mrb[2].mxu1  ;;  %1664 = vmatprep.subr.bf16.mxu0 %v3506_v18  ;;  %v3507_v38 = vld [vmem:[%s5310_s2 + $0x28] ss:$16 sps:$4 sm:$0xff]   ;;  %v3510_v18 = vld [vmem:[%s5310_s2 + $0x104] ss:$16 sps:$4 sm:$0xff]  }
  0xdd   :  { %5412 = vst [vmem:[#allocation50_spill] sm:$0xff] %v4674_v42  ;;  %v4679_v30 = vpop.f32.mrb[3].mxu1  ;;  %1824 = vmatprep.subr.bf16.mxu1 %v3505_v44  ;;  %1854 = vmatprep.mubr.bf16.mxu1 %v1619_v26  ;;  %v3509_v44 = vld [vmem:[%s5310_s2 + $0x4c] ss:$16 sps:$4 sm:$0xff]   ;;  %v3511_v26 = vld [vmem:[%s5310_s2 + $0x48] ss:$16 sps:$4 sm:$0xff]  }
  0xde   :  { %5413 = vst [vmem:[#allocation51_spill] sm:$0xff] %v4679_v30  ;;  %v1614_v42 = vld [vmem:[%s5309_s1 + $0x50] sm:$0xff]  ;;  %v3539_v52 = vld [vmem:[%s5310_s2 + $0x128] ss:$16 sps:$4 sm:$0xff]  }
  0xdf   :  { %1665 = vmatpush1.bf16.msra.mxu0 %v3508_v48  ;;  %v3513_v48 = vld [vmem:[%s5310_s2 + $0x6c] ss:$16 sps:$4 sm:$0xff]  }
  0xe0   :  { %1825 = vmatpush1.bf16.msra.mxu1 %v3507_v38  ;;  %1666 = vmatprep.subr.bf16.mxu0 %v3510_v18  ;;  %v3512_v38 = vld [vmem:[%s5310_s2 + $0x100] ss:$16 sps:$4 sm:$0xff]   ;;  %v3515_v18 = vld [vmem:[%s5310_s2 + $0x68] ss:$16 sps:$4 sm:$0xff]  }
  0xe1   :  { %1826 = vmatprep.subr.bf16.mxu1 %v3509_v44  ;;  %v3514_v44 = vld [vmem:[%s5310_s2 + $0x124] ss:$16 sps:$4 sm:$0xff]  }
  0xe3   :  { %1667 = vmatpush1.bf16.msra.mxu0 %v3512_v38  ;;  %v3517_v38 = vld [vmem:[%s5310_s2 + $0x8c] ss:$16 sps:$4 sm:$0xff]  }
  0xe4   :  { %1827 = vmatpush1.bf16.msra.mxu1 %v3511_v26  ;;  %1668 = vmatprep.subr.bf16.mxu0 %v3514_v44  ;;  %v3516_v26 = vld [vmem:[%s5310_s2 + $0x120] ss:$16 sps:$4 sm:$0xff]   ;;  %v3519_v44 = vld [vmem:[%s5310_s2 + $0x88] ss:$16 sps:$4 sm:$0xff]  }
  0xe5   :  { %1828 = vmatprep.subr.bf16.mxu1 %v3513_v48  ;;  %v3518_v48 = vld [vmem:[%s5310_s2 + $0x144] ss:$16 sps:$4 sm:$0xff]  }
  0xe7   :  { %1669 = vmatpush1.bf16.msra.mxu0 %v3516_v26  ;;  %v3521_v26 = vld [vmem:[%s5310_s2 + $0xac] ss:$16 sps:$4 sm:$0xff]  }
  0xe8   :  { %1829 = vmatpush1.bf16.msra.mxu1 %v3515_v18  ;;  %1670 = vmatprep.subr.bf16.mxu0 %v3518_v48  ;;  %v3520_v18 = vld [vmem:[%s5310_s2 + $0x140] ss:$16 sps:$4 sm:$0xff]   ;;  %v3523_v48 = vld [vmem:[%s5310_s2 + $0xa8] ss:$16 sps:$4 sm:$0xff]  }
  0xe9   :  { %1830 = vmatprep.subr.bf16.mxu1 %v3517_v38  ;;  %v3522_v38 = vld [vmem:[%s5310_s2 + $0x164] ss:$16 sps:$4 sm:$0xff]  }
  0xeb   :  { %1671 = vmatpush1.bf16.msra.mxu0 %v3520_v18  ;;  %v3525_v18 = vld [vmem:[%s5310_s2 + $0xcc] ss:$16 sps:$4 sm:$0xff]  }
  0xec   :  { %1831 = vmatpush1.bf16.msra.mxu1 %v3519_v44  ;;  %1672 = vmatprep.subr.bf16.mxu0 %v3522_v38  ;;  %v3524_v44 = vld [vmem:[%s5310_s2 + $0x160] ss:$16 sps:$4 sm:$0xff]   ;;  %v3527_v38 = vld [vmem:[%s5310_s2 + $0xc8] ss:$16 sps:$4 sm:$0xff]  }
  0xed   :  { %1832 = vmatprep.subr.bf16.mxu1 %v3521_v26  ;;  %v3526_v26 = vld [vmem:[%s5310_s2 + $0x184] ss:$16 sps:$4 sm:$0xff]  }
  0xef   :  { %1673 = vmatpush1.bf16.msra.mxu0 %v3524_v44  ;;  %v3529_v44 = vld [vmem:[%s5310_s2 + $0xec] ss:$16 sps:$4 sm:$0xff]  }
  0xf0   :  { %1833 = vmatpush1.bf16.msra.mxu1 %v3523_v48  ;;  %1674 = vmatprep.subr.bf16.mxu0 %v3526_v26  ;;  %v3528_v48 = vld [vmem:[%s5310_s2 + $0x180] ss:$16 sps:$4 sm:$0xff]   ;;  %v3531_v26 = vld [vmem:[%s5310_s2 + $0xe8] ss:$16 sps:$4 sm:$0xff]  }
  0xf1   :  { %1834 = vmatprep.subr.bf16.mxu1 %v3525_v18  ;;  %v3530_v18 = vld [vmem:[%s5310_s2 + $0x1a4] ss:$16 sps:$4 sm:$0xff]  }
  0xf3   :  { %1675 = vmatpush1.bf16.msra.mxu0 %v3528_v48  ;;  %v3533_v48 = vld [vmem:[%s5310_s2 + $0x10c] ss:$16 sps:$4 sm:$0xff]  }
  0xf4   :  { %1835 = vmatpush1.bf16.msra.mxu1 %v3527_v38  ;;  %1676 = vmatprep.subr.bf16.mxu0 %v3530_v18  ;;  %v3532_v38 = vld [vmem:[%s5310_s2 + $0x1a0] ss:$16 sps:$4 sm:$0xff]   ;;  %v3535_v18 = vld [vmem:[%s5310_s2 + $0x108] ss:$16 sps:$4 sm:$0xff]  }
  0xf5   :  { %1836 = vmatprep.subr.bf16.mxu1 %v3529_v44  ;;  %v3534_v44 = vld [vmem:[%s5310_s2 + $0x1c4] ss:$16 sps:$4 sm:$0xff]  }
  0xf7   :  { %1677 = vmatpush1.bf16.msra.mxu0 %v3532_v38  ;;  %v1604_v38 = vld [vmem:[%s5309_s1] sm:$0xff] }
  0xf8   :  { %1837 = vmatpush1.bf16.msra.mxu1 %v3531_v26  ;;  %1678 = vmatprep.subr.bf16.mxu0 %v3534_v44  ;;  %v3536_v26 = vld [vmem:[%s5310_s2 + $0x1c0] ss:$16 sps:$4 sm:$0xff]   ;;  %v3537_v44 = vld [vmem:[%s5310_s2 + $0x12c] ss:$16 sps:$4 sm:$0xff]  }
  0xf9   :  { %1838 = vmatprep.subr.bf16.mxu1 %v3533_v48  ;;  %v1611_v48 = vld [vmem:[%s5309_s1 + $0x38] sm:$0xff] }
  0xfa   :  { %v1618_v30 = vpack.c.bf16 %v1611_v48, %v1604_v38  ;;  %v3541_v38 = vld [vmem:[%s5310_s2 + $0x14c] ss:$16 sps:$4 sm:$0xff]   ;;  %v3542_v48 = vld [vmem:[%s5310_s2 + $0x204] ss:$16 sps:$4 sm:$0xff]  }
  0xfb   :  { %1679 = vmatpush1.bf16.msra.mxu0 %v3536_v26  ;;  %v1607_v26 = vld [vmem:[%s5309_s1 + $0x18] sm:$0xff] }
  0xfc   :  { %1839 = vmatpush1.bf16.msra.mxu1 %v3535_v18  ;;  %v3538_v18 = vld [vmem:[%s5310_s2 + $0x1e4] ss:$16 sps:$4 sm:$0xff]  }
  0xfd   :  { %1840 = vmatprep.subr.bf16.mxu1 %v3537_v44  ;;  %1680 = vmatprep.subr.bf16.mxu0 %v3538_v18  ;;  %v3540_v44 = vld [vmem:[%s5310_s2 + $0x1e0] ss:$16 sps:$4 sm:$0xff]   ;;  %v1621_v18 = vpack.c.bf16 %v1614_v42, %v1607_v26  ;;  %v3546_v42 = vld [vmem:[%s5310_s2 + $0x224] ss:$16 sps:$4 sm:$0xff]   ;;  %v3547_v26 = vld [vmem:[%s5310_s2 + $0x168] ss:$16 sps:$4 sm:$0xff]  }
  0xff   :  { %1681 = vmatpush1.bf16.msra.mxu0 %v3540_v44  ;;  %v3544_v44 = vld [vmem:[%s5310_s2 + $0x200] ss:$16 sps:$4 sm:$0xff]  }
 0x100   :  { %1841 = vmatpush1.bf16.msra.mxu1 %v3539_v52  ;;  %1693 = vmatprep.subr.bf16.mxu0 %v3542_v48  ;;  %v3543_v52 = vld [vmem:[%s5310_s2 + $0x148] ss:$16 sps:$4 sm:$0xff]   ;;  %v3548_v48 = vld [vmem:[%s5310_s2 + $0x220] ss:$16 sps:$4 sm:$0xff]  }
 0x101   :  { %1842 = vmatprep.subr.bf16.mxu1 %v3541_v38  ;;  %v3545_v38 = vld [vmem:[%s5310_s2 + $0x16c] ss:$16 sps:$4 sm:$0xff]  }
 0x102   :  { %1683 = vmatmul.mubr.bf16.vlgmr.msra.gmra.mrb[4].mxu0 %v1618_v30 }
 0x103   :  { %1694 = vmatpush1.bf16.msra.mxu0 %v3544_v44  ;;  %1725 = vmatprep.mubr.bf16.mxu0 %v1621_v18  ;;  %v3550_v44 = vld [vmem:[%s5310_s2 + $0x244] ss:$16 sps:$4 sm:$0xff]  }
 0x104   :  { %1843 = vmatpush1.bf16.msra.mxu1 %v3543_v52  ;;  %1695 = vmatprep.subr.bf16.mxu0 %v3546_v42  ;;  %v3549_v52 = vld [vmem:[%s5310_s2 + $0x18c] ss:$16 sps:$4 sm:$0xff]   ;;  %v3552_v42 = vld [vmem:[%s5310_s2 + $0x240] ss:$16 sps:$4 sm:$0xff]  }
 0x105   :  { %1844 = vmatprep.subr.bf16.mxu1 %v3545_v38  ;;  %v3551_v38 = vld [vmem:[%s5310_s2 + $0x188] ss:$16 sps:$4 sm:$0xff]  }
 0x107   :  { %1696 = vmatpush1.bf16.msra.mxu0 %v3548_v48  ;;  %v3554_v48 = vld [vmem:[%s5310_s2 + $0x264] ss:$16 sps:$4 sm:$0xff]  }
 0x108   :  { %1845 = vmatpush1.bf16.msra.mxu1 %v3547_v26  ;;  %1697 = vmatprep.subr.bf16.mxu0 %v3550_v44  ;;  %v3553_v26 = vld [vmem:[%s5310_s2 + $0x1ac] ss:$16 sps:$4 sm:$0xff]   ;;  %v3556_v44 = vld [vmem:[%s5310_s2 + $0x260] ss:$16 sps:$4 sm:$0xff]  }
 0x109   :  { %1846 = vmatprep.subr.bf16.mxu1 %v3549_v52  ;;  %v3555_v52 = vld [vmem:[%s5310_s2 + $0x1a8] ss:$16 sps:$4 sm:$0xff]  }
 0x10b   :  { %1698 = vmatpush1.bf16.msra.mxu0 %v3552_v42  ;;  %v3558_v42 = vld [vmem:[%s5310_s2 + $0x284] ss:$16 sps:$4 sm:$0xff]  }
 0x10c   :  { %1847 = vmatpush1.bf16.msra.mxu1 %v3551_v38  ;;  %1699 = vmatprep.subr.bf16.mxu0 %v3554_v48  ;;  %v3557_v38 = vld [vmem:[%s5310_s2 + $0x1cc] ss:$16 sps:$4 sm:$0xff]   ;;  %v3560_v48 = vld [vmem:[%s5310_s2 + $0x280] ss:$16 sps:$4 sm:$0xff]  }
 0x10d   :  { %1848 = vmatprep.subr.bf16.mxu1 %v3553_v26  ;;  %v3559_v26 = vld [vmem:[%s5310_s2 + $0x1c8] ss:$16 sps:$4 sm:$0xff]  }
 0x10f   :  { %1700 = vmatpush1.bf16.msra.mxu0 %v3556_v44  ;;  %v3562_v44 = vld [vmem:[%s5310_s2 + $0x2a4] ss:$16 sps:$4 sm:$0xff]  }
 0x110   :  { %1849 = vmatpush1.bf16.msra.mxu1 %v3555_v52  ;;  %1701 = vmatprep.subr.bf16.mxu0 %v3558_v42  ;;  %v3561_v52 = vld [vmem:[%s5310_s2 + $0x1ec] ss:$16 sps:$4 sm:$0xff]   ;;  %v3564_v42 = vld [vmem:[%s5310_s2 + $0x2a0] ss:$16 sps:$4 sm:$0xff]  }
 0x111   :  { %1850 = vmatprep.subr.bf16.mxu1 %v3557_v38  ;;  %v3563_v38 = vld [vmem:[%s5310_s2 + $0x1e8] ss:$16 sps:$4 sm:$0xff]  }
 0x113   :  { %1702 = vmatpush1.bf16.msra.mxu0 %v3560_v48  ;;  %v3566_v48 = vld [vmem:[%s5310_s2 + $0x2c4] ss:$16 sps:$4 sm:$0xff]  }
 0x114   :  { %1851 = vmatpush1.bf16.msra.mxu1 %v3559_v26  ;;  %1703 = vmatprep.subr.bf16.mxu0 %v3562_v44  ;;  %v3565_v26 = vld [vmem:[%s5310_s2 + $0x20c] ss:$16 sps:$4 sm:$0xff]   ;;  %v3568_v44 = vld [vmem:[%s5310_s2 + $0x2c0] ss:$16 sps:$4 sm:$0xff]  }
 0x115   :  { %1852 = vmatprep.subr.bf16.mxu1 %v3561_v52  ;;  %v3567_v52 = vld [vmem:[%s5310_s2 + $0x208] ss:$16 sps:$4 sm:$0xff]  }
 0x117   :  { %1704 = vmatpush1.bf16.msra.mxu0 %v3564_v42  ;;  %v3570_v42 = vld [vmem:[%s5310_s2 + $0x2e4] ss:$16 sps:$4 sm:$0xff]  }
 0x118   :  { %1853 = vmatpush1.bf16.msra.mxu1 %v3563_v38  ;;  %1705 = vmatprep.subr.bf16.mxu0 %v3566_v48  ;;  %v3569_v38 = vld [vmem:[%s5310_s2 + $0x22c] ss:$16 sps:$4 sm:$0xff]   ;;  %v3573_v48 = vld [vmem:[%s5310_s2 + $0x248] ss:$16 sps:$4 sm:$0xff]  }
 0x119   :  { %1865 = vmatprep.subr.bf16.mxu1 %v3565_v26  ;;  %v3572_v26 = vld [vmem:[%s5310_s2 + $0x24c] ss:$16 sps:$4 sm:$0xff]  }
 0x11b   :  { %1855 = vmatmul.mubr.bf16.vlgmr.msra.gmra.mrb[12].mxu1 %v1618_v30  ;;  %1706 = vmatpush1.bf16.msra.mxu0 %v3568_v44  ;;  %v3571_v30 = vld [vmem:[%s5310_s2 + $0x228] ss:$16 sps:$4 sm:$0xff]   ;;  %v5446_v44 = vld [vmem:[#allocation31_spill] sm:$0xff] }
 0x11c   :  { %1866 = vmatpush1.bf16.msra.mxu1 %v3567_v52  ;;  %1707 = vmatprep.subr.bf16.mxu0 %v3570_v42  ;;  %v3432_v52 = vld [vmem:[%s5314_s6 + $0x8] sm:$0xff]   ;;  %v256_v42 = vlaneseq }
 0x11d   :  { %1867 = vmatprep.subr.bf16.mxu1 %v3569_v38  ;;  %1897 = vmatprep.mubr.bf16.mxu1 %v1621_v18  ;;  %v3574_v18 = vld [vmem:[%s5310_s2 + $0x26c] ss:$16 sps:$4 sm:$0xff]   ;;  %v3433_v38 = vld [vmem:[%s5314_s6 + $0x50] sm:$0xff]  }
 0x11f   :  { %1708 = vmatpush1.bf16.msra.mxu0 %v3984_v45  ;;  %v3575_v45 = vld [vmem:[%s5310_s2 + $0x268] ss:$16 sps:$4 sm:$0xff]  }
 0x120   :  { %1868 = vmatpush1.bf16.msra.mxu1 %v3571_v30  ;;  %1709 = vmatprep.subr.bf16.mxu0 %v3992_v47  ;;  %v3576_v47 = vld [vmem:[%s5310_s2 + $0x28c] ss:$16 sps:$4 sm:$0xff]   ;;  %v5447_v30 = vld [vmem:[#allocation33_spill] sm:$0xff] }
 0x121   :  { %1869 = vmatprep.subr.bf16.mxu1 %v3572_v26  ;;  %v3434_v26 = vld [vmem:[%s5314_s6 + $0x10] sm:$0xff]  }
 0x123   :  { %1710 = vmatpush1.bf16.msra.mxu0 %v4001_v49  ;;  %v3577_v49 = vld [vmem:[%s5310_s2 + $0x288] ss:$16 sps:$4 sm:$0xff]  }
 0x124   :  { %1870 = vmatpush1.bf16.msra.mxu1 %v3573_v48  ;;  %1711 = vmatprep.subr.bf16.mxu0 %v4010_v51  ;;  %v3578_v51 = vld [vmem:[%s5310_s2 + $0x2ac] ss:$16 sps:$4 sm:$0xff]   ;;  %v5448_v48 = vld [vmem:[#allocation35_spill] sm:$0xff] }
 0x125   :  { %1871 = vmatprep.subr.bf16.mxu1 %v3574_v18  ;;  %v3435_v18 = vld [vmem:[%s5314_s6 + $0x58] sm:$0xff]  }
 0x127   :  { %1712 = vmatpush1.bf16.msra.mxu0 %v4019_v53  ;;  %v3579_v53 = vld [vmem:[%s5310_s2 + $0x2a8] ss:$16 sps:$4 sm:$0xff]  }
 0x128   :  { %1872 = vmatpush1.bf16.msra.mxu1 %v3575_v45  ;;  %1713 = vmatprep.subr.bf16.mxu0 %v4030_v55  ;;  %v3580_v55 = vld [vmem:[%s5310_s2 + $0x2cc] ss:$16 sps:$4 sm:$0xff]   ;;  %v5061_v45 = vshrl.u32 %v256_v42, 7 }
 0x129   :  { %1873 = vmatprep.subr.bf16.mxu1 %v3576_v47  ;;  %v5449_v47 = vld [vmem:[#allocation37_spill] sm:$0xff] }
 0x12b   :  { %1714 = vmatpush1.bf16.msra.mxu0 %v4042_v57  ;;  %v3581_v57 = vld [vmem:[%s5310_s2 + $0x2c8] ss:$16 sps:$4 sm:$0xff]  }
 0x12c   :  { %1874 = vmatpush1.bf16.msra.mxu1 %v3577_v49  ;;  %1715 = vmatprep.subr.bf16.mxu0 %v4054_v59  ;;  %v3582_v59 = vld [vmem:[%s5310_s2 + $0x2ec] ss:$16 sps:$4 sm:$0xff]  }
 0x12d   :  { %1875 = vmatprep.subr.bf16.mxu1 %v3578_v51  ;;  %v3436_v49 = vld [vmem:[%s5314_s6 + $0x18] sm:$0xff]   ;;  %v5450_v51 = vld [vmem:[#allocation39_spill] sm:$0xff] }
 0x12f   :  { %1716 = vmatpush1.bf16.msra.mxu0 %v4066_v61  ;;  %v3583_v61 = vld [vmem:[%s5310_s2 + $0x2e8] ss:$16 sps:$4 sm:$0xff]  }
 0x130   :  { %1876 = vmatpush1.bf16.msra.mxu1 %v3579_v53  ;;  %1717 = vmatprep.subr.bf16.mxu0 %v4078_v63  ;;  %v3584_v63 = vld [vmem:[%s5310_s2 + $0x30c] ss:$16 sps:$4 sm:$0xff]   ;;  %v3437_v53 = vld [vmem:[%s5314_s6 + $0x60] sm:$0xff]  }
 0x131   :  { %1877 = vmatprep.subr.bf16.mxu1 %v3580_v55  ;;  %v258_v55 = vsub.s32 0, %v5061_v45 }
 0x133   :  { %1718 = vmatpush1.bf16.msra.mxu0 %v4090_v1  ;;  %v1606_v1 = vld [vmem:[%s5309_s1 + $0x10] sm:$0xff] }
 0x134   :  { %1878 = vmatpush1.bf16.msra.mxu1 %v3581_v57  ;;  %1719 = vmatprep.subr.bf16.mxu0 %v4102_v4  ;;  %v1613_v4 = vld [vmem:[%s5309_s1 + $0x48] sm:$0xff]  ;;  %v5451_v57 = vld [vmem:[#allocation41_spill] sm:$0xff] }
 0x135   :  { %1879 = vmatprep.subr.bf16.mxu1 %v3582_v59  ;;  %v254_v59 = vld [vmem:[%s5311_s3] sm:$0xf] }
 0x137   :  { %1720 = vmatpush1.bf16.msra.mxu0 %v4114_v6  ;;  %v1620_v6 = vpack.c.bf16 %v1613_v4, %v1606_v1  ;;  %v5452_v1 = vld [vmem:[#allocation42_spill] sm:$0xff]  ;;  %v259_v4 = vrot.slane %v254_v59, %v258_v55 }
 0x138   :  { %1880 = vmatpush1.bf16.msra.mxu1 %v3583_v61  ;;  %1721 = vmatprep.subr.bf16.mxu0 %v4126_v9  ;;  %v1609_v9 = vld [vmem:[%s5309_s1 + $0x28] sm:$0xff]  ;;  %v262_v61 = vsub.s32 1, %v5061_v45 }
 0x139   :  { %1881 = vmatprep.subr.bf16.mxu1 %v3584_v63  ;;  %v3438_v63 = vld [vmem:[%s5314_s6 + $0x20] sm:$0xff]  }
 0x13b   :  { %1722 = vmatpush1.bf16.msra.mxu0 %v4138_v11  ;;  %v5422_v11 = vld [vmem:[#allocation22_spill] sm:$0xff] }
 0x13c   :  { %1882 = vmatpush1.bf16.msra.mxu1 %v4024_v54  ;;  %1723 = vmatprep.subr.bf16.mxu0 %v4150_v13  ;;  %v1616_v54 = vld [vmem:[%s5309_s1 + $0x60] sm:$0xff]  ;;  %v5424_v13 = vld [vmem:[#allocation24_spill] sm:$0xff] }
 0x13d   :  { %1883 = vmatprep.subr.bf16.mxu1 %v4035_v56  ;;  %v1623_v56 = vpack.c.bf16 %v1616_v54, %v1609_v9  ;;  %v263_v9 = vrot.slane %v254_v59, %v262_v61  ;;  %v5454_v54 = vld [vmem:[#allocation45_spill] sm:$0xff] }
 0x13f   :  { %1724 = vmatpush1.bf16.msra.mxu0 %v4160_v15  ;;  %v5426_v15 = vld [vmem:[#allocation26_spill] sm:$0xff] }
 0x140   :  { %1884 = vmatpush1.bf16.msra.mxu1 %v4047_v58  ;;  %1736 = vmatprep.subr.bf16.mxu0 %v4180_v19  ;;  %v5414_v58 = vld [vmem:[#allocation14_spill] sm:$0xff]  ;;  %v5428_v19 = vld [vmem:[#allocation28_spill] sm:$0xff] }
 0x141   :  { %1885 = vmatprep.subr.bf16.mxu1 %v4059_v60  ;;  %v5415_v60 = vld [vmem:[#allocation5_spill] sm:$0xff] }
 0x142   :  { %1726 = vmatmul.mubr.bf16.vlgmr.msra.gmra.mrb[4].mxu0 %v1620_v6 }
 0x143   :  { %1737 = vmatpush1.bf16.msra.mxu0 %v4192_v22  ;;  %1768 = vmatprep.mubr.bf16.mxu0 %v1623_v56  ;;  %v5430_v22 = vld [vmem:[#allocation30_spill] sm:$0xff] }
 0x144   :  { %1886 = vmatpush1.bf16.msra.mxu1 %v4071_v62  ;;  %1738 = vmatprep.subr.bf16.mxu0 %v4204_v24  ;;  %v5416_v62 = vld [vmem:[#allocation16_spill] sm:$0xff] }
 0x145   :  { %1887 = vmatprep.subr.bf16.mxu1 %v4083_v0  ;;  %v5417_v0 = vld [vmem:[#allocation6_spill] sm:$0xff]  ;;  %v5432_v24 = vld [vmem:[#allocation32_spill] sm:$0xff] }
 0x147   :  { %1739 = vmatpush1.bf16.msra.mxu0 %v4222_v28  ;;  %v5434_v28 = vld [vmem:[#allocation34_spill] sm:$0xff] }
 0x148   :  { %1888 = vmatpush1.bf16.msra.mxu1 %v4095_v3  ;;  %1740 = vmatprep.subr.bf16.mxu0 %v4234_v31  ;;  %v5418_v3 = vld [vmem:[#allocation18_spill] sm:$0xff]  ;;  %v5436_v31 = vld [vmem:[#allocation36_spill] sm:$0xff] }
 0x149   :  { %1889 = vmatprep.subr.bf16.mxu1 %v4107_v5  ;;  %v5419_v5 = vld [vmem:[#allocation7_spill] sm:$0xff] }
 0x14b   :  { %1741 = vmatpush1.bf16.msra.mxu0 %v4246_v33  ;;  %v5438_v33 = vld [vmem:[#allocation38_spill] sm:$0xff] }
 0x14c   :  { %1890 = vmatpush1.bf16.msra.mxu1 %v4119_v7  ;;  %1742 = vmatprep.subr.bf16.mxu0 %v4256_v35  ;;  %v5420_v7 = vld [vmem:[#allocation20_spill] sm:$0xff] }
 0x14d   :  { %1891 = vmatprep.subr.bf16.mxu1 %v4131_v10  ;;  %v5421_v10 = vld [vmem:[#allocation8_spill] sm:$0xff] }
 0x14e   :  { %v5440_v35 = vld [vmem:[#allocation40_spill] sm:$0xff] }
 0x14f   :  { %1743 = vmatpush1.bf16.msra.mxu0 %v4268_v37  ;;  %v1615_v37 = vld [vmem:[%s5309_s1 + $0x58] sm:$0xff] }
 0x150   :  { %1892 = vmatpush1.bf16.msra.mxu1 %v4143_v12  ;;  %1744 = vmatprep.subr.bf16.mxu0 %v4278_v39  ;;  %v5423_v12 = vld [vmem:[#allocation9_spill] sm:$0xff]  ;;  %v5441_v39 = vld [vmem:[#allocation23_spill] sm:$0xff] }
 0x151   :  { %1893 = vmatprep.subr.bf16.mxu1 %v4155_v14  ;;  %v5425_v14 = vld [vmem:[#allocation10_spill] sm:$0xff] }
 0x153   :  { %1745 = vmatpush1.bf16.msra.mxu0 %v4292_v41  ;;  %v3429_v41 = vld [vmem:[%s5314_s6 + $0x40] sm:$0xff]  }
 0x154   :  { %1894 = vmatpush1.bf16.msra.mxu1 %v4165_v16  ;;  %1746 = vmatprep.subr.bf16.mxu0 %v4302_v43  ;;  %v5427_v16 = vld [vmem:[#allocation11_spill] sm:$0xff] }
 0x155   :  { %1895 = vmatprep.subr.bf16.mxu1 %v4185_v20  ;;  %v5429_v20 = vld [vmem:[#allocation12_spill] sm:$0xff] }
 0x157   :  { %1747 = vmatpush1.bf16.msra.mxu0 %v4316_v46  ;;  %v5442_v46 = vld [vmem:[#allocation25_spill] sm:$0xff] }
 0x158   :  { %1896 = vmatpush1.bf16.msra.mxu1 %v4197_v23  ;;  %1748 = vmatprep.subr.bf16.mxu0 %v4326_v50  ;;  %v5431_v23 = vld [vmem:[#allocation13_spill] sm:$0xff]  ;;  %v5443_v50 = vld [vmem:[#allocation43_spill] sm:$0xff] }
 0x159   :  { %1908 = vmatprep.subr.bf16.mxu1 %v4209_v25  ;;  %v5433_v25 = vld [vmem:[#allocation15_spill] sm:$0xff] }
 0x15b   :  { %1898 = vmatmul.mubr.bf16.vlgmr.msra.gmra.mrb[12].mxu1 %v1620_v6  ;;  %1749 = vmatpush1.bf16.msra.mxu0 %v4340_v17  ;;  %v3430_v17 = vld [vmem:[%s5314_s6] sm:$0xff]   ;;  %v5453_v6 = vld [vmem:[#allocation44_spill] sm:$0xff] }
 0x15c   :  { %1909 = vmatpush1.bf16.msra.mxu1 %v4227_v29  ;;  %1750 = vmatprep.subr.bf16.mxu0 %v4350_v21  ;;  %v5435_v29 = vld [vmem:[#allocation17_spill] sm:$0xff]  ;;  %v5444_v21 = vld [vmem:[#allocation27_spill] sm:$0xff] }
 0x15d   :  { %1910 = vmatprep.subr.bf16.mxu1 %v4239_v32  ;;  %1940 = vmatprep.mubr.bf16.mxu1 %v1623_v56  ;;  %v5437_v32 = vld [vmem:[#allocation19_spill] sm:$0xff] }
 0x15f   :  { %1751 = vmatpush1.bf16.msra.mxu0 %v4364_v27  ;;  %v5445_v27 = vld [vmem:[#allocation29_spill] sm:$0xff] }
 0x160   :  { %1911 = vmatpush1.bf16.msra.mxu1 %v4251_v34  ;;  %1752 = vmatprep.subr.bf16.mxu0 %v5414_v58  ;;  %v5439_v34 = vld [vmem:[#allocation21_spill] sm:$0xff] }
 0x161   :  { %1912 = vmatprep.subr.bf16.mxu1 %v4263_v36  ;;  %v1608_v36 = vld [vmem:[%s5309_s1 + $0x20] sm:$0xff] }
 0x162   :  { %v1622_v43 = vpack.c.bf16 %v1615_v37, %v1608_v36  ;;  %v5461_v36 = vld [vmem:[#allocation48_spill] sm:$0xff] }
 0x163   :  { %1753 = vmatpush1.bf16.msra.mxu0 %v5416_v62 }
 0x164   :  { %1913 = vmatpush1.bf16.msra.mxu1 %v5415_v60  ;;  %1754 = vmatprep.subr.bf16.mxu0 %v5418_v3 }
 0x165   :  { %1914 = vmatprep.subr.bf16.mxu1 %v5417_v0 }
 0x167   :  { %1755 = vmatpush1.bf16.msra.mxu0 %v5420_v7 }
 0x168   :  { %1915 = vmatpush1.bf16.msra.mxu1 %v5419_v5  ;;  %1756 = vmatprep.subr.bf16.mxu0 %v5422_v11  ;;  %v5456_v11 = vld [vmem:[#allocation49_spill] sm:$0xff] }
 0x169   :  { %1916 = vmatprep.subr.bf16.mxu1 %v5421_v10  ;;  %v5455_v10 = vld [vmem:[#allocation46_spill] sm:$0xff] }
 0x16b   :  { %1757 = vmatpush1.bf16.msra.mxu0 %v5424_v13 }
 0x16c   :  { %1917 = vmatpush1.bf16.msra.mxu1 %v5423_v12  ;;  %1758 = vmatprep.subr.bf16.mxu0 %v5426_v15 }
 0x16d   :  { %1918 = vmatprep.subr.bf16.mxu1 %v5425_v14  ;;  %v5457_v14 = vld [vmem:[#allocation50_spill] sm:$0xff] }
 0x16f   :  { %1759 = vmatpush1.bf16.msra.mxu0 %v5428_v19 }
 0x170   :  { %1919 = vmatpush1.bf16.msra.mxu1 %v5427_v16  ;;  %1760 = vmatprep.subr.bf16.mxu0 %v5430_v22  ;;  %v5458_v16 = vld [vmem:[#allocation51_spill] sm:$0xff]  ;;  %v5460_v22 = vmov 0  }
 0x171   :  { %1920 = vmatprep.subr.bf16.mxu1 %v5429_v20  ;;  %v5459_v20 = vld [vmem:[#allocation47_spill] sm:$0xff] }
 0x173   :  { %1761 = vmatpush1.bf16.msra.mxu0 %v5432_v24 }
 0x174   :  { %1921 = vmatpush1.bf16.msra.mxu1 %v5431_v23  ;;  %1762 = vmatprep.subr.bf16.mxu0 %v5434_v28  ;;  %v266_v28 = vsub.s32 2, %v5061_v45 }
 0x175   :  { %1922 = vmatprep.subr.bf16.mxu1 %v5433_v25 }
 0x177   :  { %1763 = vmatpush1.bf16.msra.mxu0 %v5436_v31 }
 0x178   :  { %1923 = vmatpush1.bf16.msra.mxu1 %v5435_v29  ;;  %1764 = vmatprep.subr.bf16.mxu0 %v5438_v33  ;;  %v270_v29 = vsub.s32 3, %v5061_v45  ;;  %v3468_v45 = vld [vmem:[%s5313_s5 + $0x38] sm:$0xff]  }
 0x179   :  { %1924 = vmatprep.subr.bf16.mxu1 %v5437_v32  ;;  %v267_v32 = vrot.slane %v254_v59, %v266_v28 }
 0x17a   :  { %v271_v33 = vrot.slane %v254_v59, %v270_v29  ;;  %v3446_v59 = vld [vmem:[%s5313_s5 + $0x40] sm:$0xff]  }
 0x17b   :  { %1765 = vmatpush1.bf16.msra.mxu0 %v5440_v35 }
 0x17c   :  { %1925 = vmatpush1.bf16.msra.mxu1 %v5439_v34  ;;  %1766 = vmatprep.subr.bf16.mxu0 %v4546_v2  ;;  %v3431_v2 = vld [vmem:[%s5314_s6 + $0x48] sm:$0xff]  }
 0x17d   :  { %1926 = vmatprep.subr.bf16.mxu1 %v5441_v39 }
 0x17f   :  { %1767 = vmatpush1.bf16.msra.mxu0 %v5443_v50 }
 0x180   :  { %1927 = vmatpush1.bf16.msra.mxu1 %v5442_v46  ;;  %2992 = vmatprep.subr.bf16.mxu0 %v3429_v41 }
 0x181   :  { %1928 = vmatprep.subr.bf16.mxu1 %v5444_v21 }
 0x182   :  { %1769 = vmatmul.mubr.bf16.vlgmr.msra.gmra.mrb[4].mxu0 %v1622_v43 }
 0x183   :  { %2993 = vmatpush3.bf16.msra.mxu0 %v3430_v17 }
 0x184   :  { %1929 = vmatpush1.bf16.msra.mxu1 %v5445_v27  ;;  %2994 = vmatprep.subr.bf16.mxu0 %v3431_v2 }
 0x185   :  { %1930 = vmatprep.subr.bf16.mxu1 %v5446_v44 }
 0x187   :  { %2995 = vmatpush3.bf16.msra.mxu0 %v3432_v52 }
 0x188   :  { %1931 = vmatpush1.bf16.msra.mxu1 %v5447_v30  ;;  %2996 = vmatprep.subr.bf16.mxu0 %v3433_v38 }
 0x189   :  { %1932 = vmatprep.subr.bf16.mxu1 %v5448_v48  ;;  %v3439_v48 = vld [vmem:[%s5314_s6 + $0x68] sm:$0xff]  }
 0x18b   :  { %2997 = vmatpush3.bf16.msra.mxu0 %v3434_v26 }
 0x18c   :  { %1933 = vmatpush1.bf16.msra.mxu1 %v5449_v47  ;;  %2998 = vmatprep.subr.bf16.mxu0 %v3435_v18  ;;  %v3440_v18 = vld [vmem:[%s5314_s6 + $0x28] sm:$0xff]   ;;  %v3441_v47 = vld [vmem:[%s5314_s6 + $0x70] sm:$0xff]  }
 0x18d   :  { %1934 = vmatprep.subr.bf16.mxu1 %v5450_v51  ;;  %v3443_v51 = vld [vmem:[%s5314_s6 + $0x78] sm:$0xff]  }
 0x18f   :  { %2999 = vmatpush3.bf16.msra.mxu0 %v3436_v49  ;;  %v3442_v49 = vld [vmem:[%s5314_s6 + $0x30] sm:$0xff]  }
 0x190   :  { %1935 = vmatpush1.bf16.msra.mxu1 %v5451_v57  ;;  %3000 = vmatprep.subr.bf16.mxu0 %v3437_v53  ;;  %v3444_v53 = vld [vmem:[%s5314_s6 + $0x38] sm:$0xff]   ;;  %v3445_v57 = vld [vmem:[%s5314_s6 + $0x80] sm:$0xff]  }
 0x191   :  { %1936 = vmatprep.subr.bf16.mxu1 %v5452_v1  ;;  %v3451_v1 = vld [vmem:[%s5314_s6 + $0x90] sm:$0xff]  }
 0x193   :  { %3001 = vmatpush3.bf16.msra.mxu0 %v3438_v63  ;;  %v3448_v63 = vld [vmem:[%s5314_s6 + $0x88] sm:$0xff]  }
 0x194   :  { %1937 = vmatpush1.bf16.msra.mxu1 %v5453_v6  ;;  %3002 = vmatprep.subr.bf16.mxu0 %v3439_v48  ;;  %v3457_v6 = vld [vmem:[%s5314_s6 + $0xa0] sm:$0xff]  }
 0x195   :  { %1938 = vmatprep.subr.bf16.mxu1 %v5454_v54  ;;  %v1380_v56 = vpop.f32.mrb[0].mxu0  ;;  %v3463_v54 = vld [vmem:[%s5314_s6 + $0xb0] sm:$0xff]  }
 0x196   :  { %v3065_v58 = vadd.f32 %v1380_v56, %v259_v4  ;;  %v1382_v60 = vpop.f32.mrb[1].mxu0  ;;  %v3466_v56 = vld [vmem:[%s5314_s6 + $0xb8] sm:$0xff]  }
 0x197   :  { %v3067_v62 = vadd.f32 %v1382_v60, %v263_v9  ;;  %v1384_v0 = vpop.f32.mrb[2].mxu0  ;;  %3003 = vmatpush3.bf16.msra.mxu0 %v3440_v18 }
 0x198   :  { %1939 = vmatpush1.bf16.msra.mxu1 %v4589_v40  ;;  %v3066_v3 = vadd.f32 %v3065_v58, %v4665_v8  ;;  %v3069_v5 = vadd.f32 %v1384_v0, %v259_v4  ;;  %v1386_v7 = vpop.f32.mrb[3].mxu0  ;;  %3004 = vmatprep.subr.bf16.mxu0 %v3441_v47  ;;  %v3454_v4 = vld [vmem:[%s5314_s6 + $0x98] sm:$0xff]   ;;  %v3469_v58 = vld [vmem:[%s5314_s6 + $0xc0] ss:$0 sps:$4 sm:$0xff]  }
 0x199   :  { %1951 = vmatprep.subr.bf16.mxu1 %v5455_v10  ;;  %v3068_v12 = vadd.f32 %v3067_v62, %v5456_v11  ;;  %v3071_v13 = vadd.f32 %v1386_v7, %v263_v9  ;;  %v3460_v9 = vld [vmem:[%s5314_s6 + $0xa8] sm:$0xff]   ;;  %v2269_v60 = vsel %vm2267_vm1, %v3469_v58, 0  ;;  %v1625_v62 = vld [vmem:[%s5312_s4] sm:$0xf] }
 0x19a   :  { %v3070_v15 = vadd.f32 %v3069_v5, %v5457_v14  ;;  %v1994_v40 = vmax.f32 %v3066_v3, 0.0  ;;  %v1630_v0 = vrot.slane %v1625_v62, %v258_v55  ;;  %v1634_v3 = vrot.slane %v1625_v62, %v262_v61  ;;  %v3447_v61 = vld [vmem:[%s5313_s5] sm:$0xff]  }
 0x19b   :  { %1941 = vmatmul.mubr.bf16.vlgmr.msra.gmra.mrb[12].mxu1 %v1622_v43  ;;  %v3072_v19 = vadd.f32 %v3071_v13, %v5458_v16  ;;  %v1995_v8 = vmax.f32 %v3068_v12, 0.0  ;;  %3005 = vmatpush3.bf16.msra.mxu0 %v3442_v49  ;;  %v3478_v58 = vld [vmem:[%s5313_s5 + $0xc0] ss:$0 sps:$4 sm:$0xff]  }
 0x19c   :  { %1952 = vmatpush1.bf16.msra.mxu1 %v5459_v20  ;;  %1983 = vmatprep.mubr.bf16.mxu1 %v5460_v22  ;;  %v1998_v23 = vmax.f32 %v3070_v15, 0.0 }
 0x19d   :  { %2312 = vmatprep.subr.bf16.mxu1 %v5460_v22  ;;  %v1999_v24 = vmax.f32 %v3072_v19, 0.0  ;;  %3006 = vmatprep.subr.bf16.mxu0 %v3443_v51 }
 0x19e   :  { %v5096_v25 = vpack.c.bf16 %v1998_v23, %v1994_v40 }
 0x19f   :  { %v5100_v31 = vpack.c.bf16 %v1999_v24, %v1995_v8  ;;  %3007 = vmatpush3.bf16.msra.mxu0 %v3444_v53 }
 0x1a0   :  { %3014 = vmatprep.subr.bf16.mxu0 %v3446_v59 }
 0x1a6   :  { %v1595_v34 = vpop.f32.mrb[4].mxu1 }
 0x1a7   :  { %v3073_v35 = vadd.f32 %v1595_v34, %v267_v32  ;;  %2929 = vmatmul.mubr.msk.bf16.vlgmr.msra.gmra.mrb[12].mxu1 %vm1256_vm0, %v5461_v36  ;;  %v1597_v37 = vpop.f32.mrb[5].mxu1  ;;  %v3449_v34 = vld [vmem:[%s5313_s5 + $0x48] sm:$0xff]   ;;  %v3452_v36 = vld [vmem:[%s5313_s5 + $0x50] sm:$0xff]  }
 0x1a8   :  { %v3074_v39 = vadd.f32 %v1597_v37, %v271_v33  ;;  %v1599_v41 = vpop.f32.mrb[6].mxu1  ;;  %2313 = vmatpush1.bf16.msra.mxu1 %v3445_v57  ;;  %v3453_v37 = vld [vmem:[%s5313_s5 + $0x10] sm:$0xff]  }
 0x1a9   :  { %v3075_v43 = vadd.f32 %v1599_v41, %v267_v32  ;;  %v1601_v46 = vpop.f32.mrb[7].mxu1  ;;  %v1996_v17 = vmax.f32 %v3073_v35, 0.0  ;;  %2314 = vmatprep.subr.bf16.mxu1 %v5460_v22  ;;  %v3450_v35 = vld [vmem:[%s5313_s5 + $0x8] sm:$0xff]   ;;  %v3458_v41 = vld [vmem:[%s5313_s5 + $0x60] sm:$0xff]  }
 0x1aa   :  { %v3076_v50 = vadd.f32 %v1601_v46, %v271_v33  ;;  %v1997_v2 = vmax.f32 %v3074_v39, 0.0  ;;  %v3455_v39 = vld [vmem:[%s5313_s5 + $0x58] sm:$0xff]   ;;  %v3461_v46 = vld [vmem:[%s5313_s5 + $0x68] sm:$0xff]  }
 0x1ab   :  { %v2000_v21 = vmax.f32 %v3075_v43, 0.0  ;;  %v3459_v43 = vld [vmem:[%s5313_s5 + $0x20] sm:$0xff]  }
 0x1ac   :  { %v2001_v27 = vmax.f32 %v3076_v50, 0.0  ;;  %2315 = vmatpush1.bf16.msra.mxu1 %v3448_v63  ;;  %v3462_v50 = vld [vmem:[%s5313_s5 + $0x28] sm:$0xff]  }
 0x1ad   :  { %v5108_v52 = vpack.c.bf16 %v2000_v21, %v1996_v17  ;;  %2316 = vmatprep.subr.bf16.mxu1 %v5460_v22  ;;  %v3464_v17 = vld [vmem:[%s5313_s5 + $0x70] sm:$0xff]   ;;  %v1638_v21 = vrot.slane %v1625_v62, %v266_v28 }
 0x1ae   :  { %v5110_v44 = vpack.c.bf16 %v2001_v27, %v1997_v2  ;;  %v1813_v38 = vpop.f32.mrb[8].mxu1  ;;  %v1642_v2 = vrot.slane %v1625_v62, %v270_v29  ;;  %v3465_v27 = vld [vmem:[%s5313_s5 + $0x30] sm:$0xff]   ;;  %v3479_v62 = vld [vmem:[%s5316_s8] sm:$0xff]  }
 0x1af   :  { %v1815_v42 = vpop.f32.mrb[9].mxu1 }
 0x1b0   :  { %v1817_v30 = vpop.f32.mrb[10].mxu1  ;;  %2317 = vmatpush1.bf16.msra.mxu1 %v3451_v1  ;;  %v3470_v1 = vld [vmem:[%s5313_s5 + $0x80] sm:$0xff]  }
 0x1b1   :  { %v1819_v26 = vpop.f32.mrb[11].mxu1  ;;  %2318 = vmatprep.subr.bf16.mxu1 %v5460_v22 }
 0x1b4   :  { %2319 = vmatpush1.bf16.msra.mxu1 %v3454_v4  ;;  %v3471_v4 = vld [vmem:[%s5313_s5 + $0x88] sm:$0xff]  }
 0x1b5   :  { %2320 = vmatprep.subr.bf16.mxu1 %v5460_v22 }
 0x1b8   :  { %2321 = vmatpush1.bf16.msra.mxu1 %v3457_v6  ;;  %v3472_v6 = vld [vmem:[%s5313_s5 + $0x90] sm:$0xff]  }
 0x1b9   :  { %2322 = vmatprep.subr.bf16.mxu1 %v5460_v22 }
 0x1bc   :  { %2323 = vmatpush1.bf16.msra.mxu1 %v3460_v9  ;;  %v3475_v9 = vld [vmem:[%s5313_s5 + $0xa8] sm:$0xff]  }
 0x1bd   :  { %2324 = vmatprep.subr.bf16.mxu1 %v5460_v22 }
 0x1c0   :  { %2325 = vmatpush1.bf16.msra.mxu1 %v3463_v54  ;;  %v3476_v54 = vld [vmem:[%s5313_s5 + $0xb0] sm:$0xff]  }
 0x1c1   :  { %2326 = vmatprep.subr.bf16.mxu1 %v5460_v22 }
 0x1c4   :  { %2327 = vmatpush1.bf16.msra.mxu1 %v3466_v56  ;;  %v3477_v56 = vld [vmem:[%s5313_s5 + $0xb8] sm:$0xff]  }
 0x1c5   :  { %2328 = vmatprep.subr.bf16.mxu1 %v5460_v22 }
 0x1c8   :  { %2329 = vmatpush1.bf16.msra.mxu1 %v2269_v60  ;;  %v2504_v60 = vsel %vm2267_vm1, %v3478_v58, 0 }
 0x1c9   :  { %2547 = vmatprep.subr.bf16.mxu1 %v5460_v22 }
 0x255   :  { %v1770_v5 = vpop.f32.mrb[4].mxu0 }
 0x256   :  { %v3077_v7 = vadd.f32 %v1770_v5, %v1630_v0  ;;  %v1772_v10 = vpop.f32.mrb[5].mxu0  ;;  %v3483_v5 = vld [vmem:[%s5316_s8 + $0x20] sm:$0xff]  }
 0x257   :  { %v3079_v11 = vadd.f32 %v1772_v10, %v1634_v3  ;;  %v1774_v12 = vpop.f32.mrb[6].mxu0  ;;  %v3485_v10 = vld [vmem:[%s5316_s8 + $0x30] sm:$0xff]  }
 0x258   :  { %v3078_v13 = vadd.f32 %v3077_v7, %v1813_v38  ;;  %v3081_v14 = vadd.f32 %v1774_v12, %v1630_v0  ;;  %v1776_v15 = vpop.f32.mrb[7].mxu0  ;;  %v3467_v38 = vld [vmem:[%s5313_s5 + $0x78] sm:$0xff]   ;;  %v3610_v0 = vmov 0.0   ;;  %v3484_v7 = vld [vmem:[%s5316_s8 + $0x28] sm:$0xff]  }
 0x259   :  { %v3080_v16 = vadd.f32 %v3079_v11, %v1815_v42  ;;  %v3083_v19 = vadd.f32 %v1776_v15, %v1634_v3  ;;  %v3480_v3 = vld [vmem:[%s5316_s8 + $0x8] sm:$0xff]   ;;  %v3486_v11 = vld [vmem:[%s5316_s8 + $0x38] sm:$0xff]  }
 0x25a   :  { %v3082_v20 = vadd.f32 %v3081_v14, %v1817_v30  ;;  %v2006_v23 = vmax.f32 %v3078_v13, 0.0 }
 0x25b   :  { %v3084_v40 = vadd.f32 %v3083_v19, %v1819_v26  ;;  %v2007_v24 = vmax.f32 %v3080_v16, 0.0 }
 0x25c   :  { %v2010_v8 = vmax.f32 %v3082_v20, 0.0 }
 0x25d   :  { %v2011_v32 = vmax.f32 %v3084_v40, 0.0 }
 0x25e   :  { %v2014_v55 = vpack.c.bf16 %v2010_v8, %v2006_v23 }
 0x25f   :  { %v2015_v33 = vpack.c.bf16 %v2011_v32, %v2007_v24 }
 0x261   :  { %2303 = vmatprep.mubr.bf16.mxu0 %v2015_v33 }
 0x262   :  { %2304 = vmatmul.mubr.bf16.vlgmr.msra.gmra.mrb[8].mxu0 %v2014_v55 }
 0x263   :  { %3015 = vmatpush3.bf16.msra.mxu0 %v3447_v61  ;;  %2538 = vmatprep.mubr.bf16.mxu0 %v5100_v31  ;;  %v3456_v31 = vld [vmem:[%s5313_s5 + $0x18] sm:$0xff]  }
 0x264   :  { %3016 = vmatprep.subr.bf16.mxu0 %v3449_v34 }
 0x267   :  { %3017 = vmatpush3.bf16.msra.mxu0 %v3450_v35 }
 0x268   :  { %3018 = vmatprep.subr.bf16.mxu0 %v3452_v36 }
 0x26b   :  { %3019 = vmatpush3.bf16.msra.mxu0 %v3453_v37 }
 0x26c   :  { %3020 = vmatprep.subr.bf16.mxu0 %v3455_v39 }
 0x26f   :  { %3021 = vmatpush3.bf16.msra.mxu0 %v3456_v31 }
 0x270   :  { %3022 = vmatprep.subr.bf16.mxu0 %v3458_v41  ;;  %v2982_v41 = vld [vmem:[%s5315_s7] ss:$0 sm:$0xff]  ;;  %s3585_s7 = scalar_lea.vmem %s2720_s23, 256 }
 0x271   :  { %p3586_p0 = scmp.ne.s32.totalorder %s2720_s23, %s3585_s7  ;;  %p3591_p2 = scmp.lt.s32.totalorder %s3585_s7, %s3585_s7 }
 0x273   :  { %3023 = vmatpush3.bf16.msra.mxu0 %v3459_v43  ;;  %p3592_p3 = por %p3591_p2, %p3590_p1 }
 0x274   :  { %3024 = vmatprep.subr.bf16.mxu0 %v3461_v46 }
 0x275   :  { %p3593_p4 = pnand %p3592_p3, %p3586_p0 }
 0x277   :  { %3025 = vmatpush3.bf16.msra.mxu0 %v3462_v50 }
 0x278   :  { %3026 = vmatprep.subr.bf16.mxu0 %v3464_v17 }
 0x27a   :  { %v1985_v42 = vpop.f32.mrb[12].mxu1 }
 0x27b   :  { %v3085_v30 = vadd.f32 %v1985_v42, %v1638_v21  ;;  %v1987_v26 = vpop.f32.mrb[13].mxu1  ;;  %3027 = vmatpush3.bf16.msra.mxu0 %v3465_v27 }
 0x27c   :  { %v3086_v48 = vadd.f32 %v1987_v26, %v1642_v2  ;;  %v1989_v18 = vpop.f32.mrb[14].mxu1  ;;  %3028 = vmatprep.subr.bf16.mxu0 %v3467_v38  ;;  %v2983_v26 = vld [vmem:[%s5317_s9] ss:$0 sm:$0xff] }
 0x27d   :  { %v3087_v28 = vadd.f32 %v1989_v18, %v1638_v21  ;;  %v1991_v29 = vpop.f32.mrb[15].mxu1  ;;  %v2008_v49 = vmax.f32 %v3085_v30, 0.0 }
 0x27e   :  { %v3088_v47 = vadd.f32 %v1991_v29, %v1642_v2  ;;  %v2009_v53 = vmax.f32 %v3086_v48, 0.0 }
 0x27f   :  { %v2012_v51 = vmax.f32 %v3087_v28, 0.0  ;;  %3029 = vmatpush3.bf16.msra.mxu0 %v3468_v45 }
 0x280   :  { %v2013_v57 = vmax.f32 %v3088_v47, 0.0  ;;  %3045 = vmatprep.subr.bf16.mxu0 %v3610_v0 }
 0x281   :  { %v2016_v59 = vpack.c.bf16 %v2012_v51, %v2008_v49 }
 0x282   :  { %v2017_v63 = vpack.c.bf16 %v2013_v57, %v2009_v53  ;;  %2539 = vmatmul.mubr.bf16.vlgmr.msra.gmra.mrb[12].mxu0 %v5096_v25  ;;  %v3473_v25 = vld [vmem:[%s5313_s5 + $0x98] sm:$0xff]  }
 0x283   :  { %3046 = vmatpush3.bf16.msra.mxu0 %v3479_v62  ;;  %3061 = vmatprep.mubr.msk.bf16.mxu0 %vm3611_vm3, %v3610_v0 }
 0x284   :  { %2955 = vmatprep.mubr.msk.bf16.mxu1 %vm2263_vm2, %v2017_v63  ;;  %3047 = vmatprep.subr.bf16.mxu0 %v3610_v0 }
 0x285   :  { %2345 = vmatmul.mubr.bf16.vlgmr.msra.gmra.mrb[16].mxu1 %v2016_v59 }
 0x286   :  { %2548 = vmatpush1.bf16.msra.mxu1 %v3470_v1  ;;  %2981 = vmatprep.mubr.msk.bf16.mxu1 %vm2263_vm2, %v5110_v44  ;;  %v3474_v44 = vld [vmem:[%s5313_s5 + $0xa0] sm:$0xff]  }
 0x287   :  { %2549 = vmatprep.subr.bf16.mxu1 %v5460_v22  ;;  %3048 = vmatpush3.bf16.msra.mxu0 %v3480_v3 }
 0x288   :  { %3049 = vmatprep.subr.bf16.mxu0 %v3610_v0 }
 0x28a   :  { %2550 = vmatpush1.bf16.msra.mxu1 %v3471_v4 }
 0x28b   :  { %2551 = vmatprep.subr.bf16.mxu1 %v5460_v22 }
 0x28e   :  { %2552 = vmatpush1.bf16.msra.mxu1 %v3472_v6 }
 0x28f   :  { %2553 = vmatprep.subr.bf16.mxu1 %v5460_v22 }
 0x292   :  { %2554 = vmatpush1.bf16.msra.mxu1 %v3473_v25 }
 0x293   :  { %2555 = vmatprep.subr.bf16.mxu1 %v5460_v22 }
 0x296   :  { %2556 = vmatpush1.bf16.msra.mxu1 %v3474_v44 }
 0x297   :  { %2557 = vmatprep.subr.bf16.mxu1 %v5460_v22 }
 0x29a   :  { %2558 = vmatpush1.bf16.msra.mxu1 %v3475_v9 }
 0x29b   :  { %2559 = vmatprep.subr.bf16.mxu1 %v5460_v22 }
 0x29e   :  { %2560 = vmatpush1.bf16.msra.mxu1 %v3476_v54 }
 0x29f   :  { %2561 = vmatprep.subr.bf16.mxu1 %v5460_v22 }
 0x2a2   :  { %2562 = vmatpush1.bf16.msra.mxu1 %v3477_v56 }
 0x2a3   :  { %2563 = vmatprep.subr.bf16.mxu1 %v5460_v22  ;;  %v3481_v22 = vld [vmem:[%s5316_s8 + $0x10] sm:$0xff]  }
 0x2a4   :  { %3050 = vmatpush3.bf16.msra.mxu0 %v3481_v22 }
 0x2a5   :  { %3051 = vmatprep.subr.bf16.mxu0 %v3610_v0 }
 0x2a6   :  { %2564 = vmatpush1.bf16.msra.mxu1 %v2504_v60 }
 0x2a9   :  { %2580 = vmatmul.mubr.bf16.vlgmr.msra.gmra.mrb[20].mxu1 %v5108_v52  ;;  %v3482_v52 = vld [vmem:[%s5316_s8 + $0x18] sm:$0xff]  }
 0x2aa   :  { %3052 = vmatpush3.bf16.msra.mxu0 %v3482_v52 }
 0x2ab   :  { %3053 = vmatprep.subr.bf16.mxu0 %v3610_v0 }
 0x2ae   :  { %3054 = vmatpush3.bf16.msra.mxu0 %v3483_v5 }
 0x2af   :  { %3055 = vmatprep.subr.bf16.mxu0 %v3610_v0 }
 0x2b2   :  { %3056 = vmatpush3.bf16.msra.mxu0 %v3484_v7 }
 0x2b3   :  { %3057 = vmatprep.subr.bf16.mxu0 %v3610_v0 }
 0x2b6   :  { %3058 = vmatpush3.bf16.msra.mxu0 %v3485_v10 }
 0x2b7   :  { %3059 = vmatprep.subr.bf16.mxu0 %v3610_v0 }
 0x2ba   :  { %3060 = vmatpush3.bf16.msra.mxu0 %v3486_v11 }
 0x335   :  { %v3008_v12 = vpop.f32.mrb[8].mxu0 }
 0x336   :  { %v3009_v13 = vpop.f32.mrb[9].mxu0 }
 0x337   :  { %v3010_v14 = vadd.f32 %v3009_v13, %v3008_v12  ;;  %v3011_v15 = vpop.f32.mrb[10].mxu0 }
 0x338   :  { %v3012_v16 = vpop.f32.mrb[11].mxu0 }
 0x339   :  { %v3013_v19 = vadd.f32 %v3012_v16, %v3011_v15 }
 0x355   :  { %v3030_v20 = vpop.f32.mrb[12].mxu0 }
 0x356   :  { %v3031_v40 = vpop.f32.mrb[13].mxu0 }
 0x357   :  { %v3032_v23 = vadd.f32 %v3031_v40, %v3030_v20  ;;  %v3033_v24 = vpop.f32.mrb[14].mxu0 }
 0x358   :  { %v2346_v8 = vpop.f32.mrb[16].mxu1  ;;  %v3034_v33 = vpop.f32.mrb[15].mxu0 }
 0x359   :  { %v2347_v32 = vadd.f32 %v3010_v14, %v2346_v8  ;;  %v2348_v55 = vpop.f32.mrb[17].mxu1  ;;  %v3035_v61 = vadd.f32 %v3034_v33, %v3033_v24 }
 0x35a   :  { %v2349_v34 = vpop.f32.mrb[18].mxu1 }
 0x35b   :  { %v2350_v35 = vadd.f32 %v3013_v19, %v2349_v34  ;;  %v2351_v36 = vpop.f32.mrb[19].mxu1  ;;  %v2541_v37 = vadd.f32 %v3032_v23, %v2347_v32 }
 0x35d   :  { %v2544_v39 = vadd.f32 %v3035_v61, %v2350_v35 }
 0x37c   :  { %v2581_v31 = vpop.f32.mrb[20].mxu1 }
 0x37d   :  { %v2582_v43 = vadd.f32 %v2581_v31, %v2541_v37  ;;  %v2583_v46 = vpop.f32.mrb[21].mxu1 }
 0x37e   :  { %v2584_v50 = vpop.f32.mrb[22].mxu1 }
 0x37f   :  { %v2595_v17 = vadd.f32 %v2982_v41, %v2582_v43  ;;  %v2585_v21 = vadd.f32 %v2584_v50, %v2544_v39  ;;  %v2586_v2 = vpop.f32.mrb[23].mxu1 }
 0x381   :  { %v2596_v27 = vadd.f32 %v2982_v41, %v2585_v21  ;;  %v2597_v38 = vmax.f32 %v2595_v17, 0.0 }
 0x383   :  { %v2598_v42 = vmax.f32 %v2596_v27, 0.0 }
 0x385   :  { %v2599_v30 = vpack.c.bf16 %v2598_v42, %v2597_v38 }
 0x387   :  { %3062 = vmatmul.mubr.bf16.vlgmr.msra.gmra.mrb[16].mxu0 %v2599_v30 }
 0x45a   :  { %v2705_v48 = vpop.f32.mrb[16].mxu0 }
 0x45b   :  { %v2706_v18 = vadd.f32 %v2983_v26, %v2705_v48  ;;  %v3063_v45 = vpop.f32.mrb[17].mxu0 }
 0x45c   :  { %v2708_v28 = vpop.f32.mrb[18].mxu0 }
 0x45d   :  { %2712 = vst [vmem:[#allocation2] sm:$0xff] %v2706_v18  ;;  %v2709_v29 = vadd.f32 %v2983_v26, %v2708_v28  ;;  %v3064_v47 = vpop.f32.mrb[19].mxu0 }
 0x45f   :  { %2713 = vst [vmem:[#allocation2 + $0x8] sm:$0xff] %v2709_v29 }
 0x460   :  { %3596 = shalt.err (!%p3593_p4)
}
 0x461   :  { %s3597_s24 = scalar_lea.hbm %s5318_s10, 256 }
 0x462   :  { %p3598_p5 = scmp.ne.s32.totalorder %s5318_s10, %s3597_s24  ;;  %p3601_p6 = scmp.lt.u32.totalorder %s3597_s24, %s5318_s10 }
 0x464   :  { %p3603_p7 = pnand %p3601_p6, %p3598_p5 }
 0x466   :  { %3606 = shalt.err (!%p3603_p7)
}
 0x467   :  { %s3613_s1 = smov 128   ;;  %s3614_s29 = smov 8  }
 0x468   :  { %2725 = dma.vmem_to_hbm [thread:$0]  %s2720_s23, 256, %s5318_s10, [#allocation3], %s3613_s1, %s3613_s1, %s3614_s29  }
 0x469   :  { %3607 = dma.done.wait [#allocation3], 256  }
 0x46a   :  { %3608 = vsyncadd [#allocation3], 4294967040 }
 0x46b   :  { %2729 = vsyncpa [#allocation3], 1 }

</bundles_post_ra>
